<compile_context>
chip_gen: v6e
topology: v6e:2x2x1
jax: 0.10.0
libtpu: 0.0.40
codegen_flags: <defaults>
</compile_context>

<pallas_src>
import jax
import jax.numpy as jnp
import numpy as np
from jax.experimental import pallas as pl
from jax.experimental.pallas import tpu as pltpu


def _round_up(x, m):
    return (x + m - 1) // m * m


# ---------------------------------------------------------------------------
# Pallas kernel (whole Incep block, NB images per grid step)
# ---------------------------------------------------------------------------

def make_incep_kernel(H, WP, NB, c1, c1p, c2p, c3, c4p, c5, c6):
    HWQ = H * WP  # output positions per image (cols >= W are garbage, sliced later)

    def window(v, ky, kx):
        # Shifted "tap" view of the flattened padded frame (static lane slice).
        s = ky * WP + kx
        return v[:, s:s + HWQ]

    def conv_im2col(r, w_ref, b_ref, K, base):
        # Materialise every shifted tap exactly once into a sublane-aligned
        # staging slab, then ONE deep MXU contraction + bias + ReLU.
        taps = [window(r, ky + base, kx + base)
                for ky in range(K) for kx in range(K)]
        col = jnp.concatenate(taps, axis=0)            # (K*K*Cpad, HWQ)
        y = jnp.dot(w_ref[...], col, preferred_element_type=jnp.float32)
        return jnp.maximum(y + b_ref[...], 0.0)

    def incep_kernel(x_ref, mask_ref,
                     wstk_ref, bstk_ref,
                     w3_ref, b3_ref,
                     w5_ref, b5_ref,
                     w4_ref, b4_ref,
                     o_ref):
        mask = mask_ref[...]                           # (1, L2P)

        for b in range(NB):                            # static unroll over images
            x = x_ref[b]                               # (Cin, L2P)

            # --- fused 1x1 stage: branch-1 conv + 3x3-reduce + 5x5-reduce in
            #     ONE matmul over the whole padded frame, then bias/ReLU/mask.
            z = jnp.dot(wstk_ref[...], x, preferred_element_type=jnp.float32)
            z = jnp.maximum(z + bstk_ref[...], 0.0) * mask
            y1 = z[0:c1, 2 * WP + 2: 2 * WP + 2 + HWQ]       # branch 1 output
            r2 = z[c1p:c1p + c2p]                            # 3x3-reduce (halo = 0)
            r3 = z[c1p + c2p:c1p + c2p + c4p]                # 5x5-reduce (halo = 0)

            # --- branch 2: reduce -> 3x3 conv (single depth-9*Cpad matmul)
            y2 = conv_im2col(r2, w3_ref, b3_ref, 3, 1)
            # --- branch 3: reduce -> 5x5 conv (single depth-25*Cpad matmul)
            y3 = conv_im2col(r3, w5_ref, b5_ref, 5, 0)

            # --- branch 4: 3x3/s1 maxpool -> ReLU -> 1x1 conv -> ReLU
            taps = [window(x, ky, kx)
                    for ky in range(1, 4) for kx in range(1, 4)]
            pooled = taps[0]
            for t in taps[1:]:
                pooled = jnp.maximum(pooled, t)
            pooled = jnp.maximum(pooled, 0.0)   # zero-pad pool + trailing ReLU == -inf pad
            y4 = jnp.maximum(
                jnp.dot(w4_ref[...], pooled, preferred_element_type=jnp.float32)
                + b4_ref[...], 0.0)

            # --- store each branch directly into its channel slice (== torch.cat dim=1)
            o_ref[b, 0:c1, :] = y1.astype(o_ref.dtype)
            o_ref[b, c1:c1 + c3, :] = y2.astype(o_ref.dtype)
            o_ref[b, c1 + c3:c1 + c3 + c5, :] = y3.astype(o_ref.dtype)
            o_ref[b, c1 + c3 + c5:c1 + c3 + c5 + c6, :] = y4.astype(o_ref.dtype)

    return incep_kernel


# ---------------------------------------------------------------------------
# Forward pass (NCHW in, NCHW out)
# ---------------------------------------------------------------------------

def incep_forward(x_nchw, p, *, images_per_step=None):
    N, Cin, H, W = x_nchw.shape

    # Padded row width: >= W+4 (2px halo each side) AND H*WP a multiple of 128
    # so output stores are lane-dense unmasked vst.
    WP = W + 4
    while (H * WP) % 128 != 0:
        WP += 1
    HP = H + 5                         # 2 rows top halo, >=3 rows bottom halo
    HWQ = H * WP
    L2 = HP * WP
    L2P = _round_up(L2, 128)           # lane-dense input slab

    c1 = p["w1"].shape[0]
    c2 = p["w2"].shape[0]
    c3 = p["w2_1"].shape[0]
    c4 = p["w3"].shape[0]
    c5 = p["w3_1"].shape[0]
    c6 = p["w4_1"].shape[0]
    c1p = _round_up(c1, 8)             # pad fused-1x1 segments to 8 sublanes
    c2p = _round_up(c2, 8)
    c4p = _round_up(c4, 8)
    ctot = c1 + c3 + c5 + c6

    # Images per grid step: amortise per-step overhead, but keep >=2 steps so
    # both v7x TensorCores get work (no-op on single-TC v5e/v6e).
    if images_per_step is None:
        images_per_step = max(1, min(4, N // 2))
    NB = images_per_step
    NP = _round_up(N, NB)

    # Pad ONCE by the maximum halo (2px), flatten spatially, lane-pad to 128.
    xp = jnp.pad(x_nchw, ((0, NP - N), (0, 0), (2, HP - H - 2), (2, WP - W - 2)))
    x_flat = jnp.pad(xp.reshape(NP, Cin, L2), ((0, 0), (0, 0), (0, L2P - L2)))

    # Validity mask (1.0 inside the original HxW image) over the padded frame.
    rows = jnp.arange(HP)
    cols = jnp.arange(WP)
    valid = ((rows[:, None] >= 2) & (rows[:, None] < 2 + H)
             & (cols[None, :] >= 2) & (cols[None, :] < 2 + W))
    mask = jnp.pad(valid.astype(x_nchw.dtype).reshape(1, L2),
                   ((0, 0), (0, L2P - L2)))

    # Fuse the three 1x1 convs reading x into one stacked weight; each segment
    # is padded to 8 sublanes (pad rows: w=0, b=0 -> relu(0)*mask = 0).
    def seg(w, b, cpad):
        cout = w.shape[0]
        wk = w.reshape(cout, -1)
        return (jnp.pad(wk, ((0, cpad - cout), (0, 0))),
                jnp.pad(b.reshape(-1, 1), ((0, cpad - cout), (0, 0))))

    w1s, b1s = seg(p["w1"], p["b1"], c1p)
    w2s, b2s = seg(p["w2"], p["b2"], c2p)
    w3s, b3s = seg(p["w3"], p["b3"], c4p)
    w_stack = jnp.concatenate([w1s, w2s, w3s], axis=0)     # (c1p+c2p+c4p, Cin)
    b_stack = jnp.concatenate([b1s, b2s, b3s], axis=0)

    # KxK weights in im2col layout (Cout, K*K*Cpad), tap-major, input channels
    # zero-padded to match the sublane-aligned in-kernel staging slab.
    def im2col_w(w, cin_pad):
        cout, cin, K, _ = w.shape
        wt = jnp.transpose(w, (0, 2, 3, 1))                  # (cout, K, K, cin)
        wt = jnp.pad(wt, ((0, 0), (0, 0), (0, 0), (0, cin_pad - cin)))
        return wt.reshape(cout, K * K * cin_pad)

    def col(b):
        return b.reshape(-1, 1)

    args = (
        x_flat, mask,
        w_stack, b_stack,
        im2col_w(p["w2_1"], c2p), col(p["b2_1"]),
        im2col_w(p["w3_1"], c4p), col(p["b3_1"]),
        p["w4_1"].reshape(c6, Cin), col(p["b4_1"]),
    )

    def whole(a):          # whole-array block, identical for every grid step
        zeros = (0,) * a.ndim
        return pl.BlockSpec(a.shape, lambda n: zeros)

    in_specs = ([pl.BlockSpec((NB, Cin, L2P), lambda n: (n, 0, 0))]
                + [whole(a) for a in args[1:]])

    kernel = make_incep_kernel(H, WP, NB, c1, c1p, c2p, c3, c4p, c5, c6)

    out = pl.pallas_call(
        kernel,
        out_shape=jax.ShapeDtypeStruct((NP, ctot, HWQ), x_nchw.dtype),
        grid=(NP // NB,),
        in_specs=in_specs,
        out_specs=pl.BlockSpec((NB, ctot, HWQ), lambda n: (n, 0, 0)),
        compiler_params=pltpu.CompilerParams(
            dimension_semantics=("parallel",)),
    )(*args)

    # Output is already channel-major (== torch.cat dim=1); drop padded columns.
    # TODO(synk): let downstream consumers accept the padded (H, WP) layout to
    # skip this extra HBM round trip.
    return out.reshape(NP, ctot, H, WP)[:N, :, :, :W]


# ---------------------------------------------------------------------------
# Pure-JAX reference (for verification)
# ---------------------------------------------------------------------------

def incep_reference(x, p):
    def conv(x, w, b, pad):
        y = jax.lax.conv_general_dilated(
            x, w, (1, 1), [(pad, pad), (pad, pad)],
            dimension_numbers=("NCHW", "OIHW", "NCHW"))
        return jax.nn.relu(y + b[None, :, None, None])

    def maxpool(x):
        return jax.lax.reduce_window(
            x, -jnp.inf, jax.lax.max, (1, 1, 3, 3), (1, 1, 1, 1),
            [(0, 0), (0, 0), (1, 1), (1, 1)])

    x1 = conv(x, p["w1"], p["b1"], 0)
    x2 = conv(conv(x, p["w2"], p["b2"], 0), p["w2_1"], p["b2_1"], 1)
    x3 = conv(conv(x, p["w3"], p["b3"], 0), p["w3_1"], p["b3_1"], 2)
    x4 = conv(jax.nn.relu(maxpool(x)), p["w4_1"], p["b4_1"], 0)
    return jnp.concatenate([x1, x2, x3, x4], axis=1)


# ---------------------------------------------------------------------------

def make_params(channels_list, key):
    c0, c1, c2, c3, c4, c5, c6 = channels_list
    shapes = {
        "w1":   (c1, c0, 1, 1), "b1":   (c1,),
        "w2":   (c2, c0, 1, 1), "b2":   (c2,),
        "w2_1": (c3, c2, 3, 3), "b2_1": (c3,),
        "w3":   (c4, c0, 1, 1), "b3":   (c4,),
        "w3_1": (c5, c4, 5, 5), "b3_1": (c5,),
        "w4_1": (c6, c0, 1, 1), "b4_1": (c6,),
    }
    params = {}
    for name, shape in shapes.items():
        key, sub = jax.random.split(key)
        scale = 0.1 if name.startswith("w") else 0.05
        params[name] = scale * jax.random.normal(sub, shape, dtype=jnp.float32)
    return params


if __name__ == "__main__":
    key = jax.random.PRNGKey(0)
    channels_list = [4, 8, 6, 8, 6, 8, 8]   # in, b1, b2red, b2, b3red, b3, b4
    k_x, k_p = jax.random.split(key)
    x = jax.random.normal(k_x, (2, 4, 16, 16), dtype=jnp.float32)  # NCHW
    params = make_params(channels_list, k_p)

    fwd = jax.jit(incep_forward)
    out = jax.block_until_ready(fwd(x, params))

    ref = jax.block_until_ready(incep_reference(x, params))
    assert out.shape == (2, 8 + 8 + 8 + 8, 16, 16), out.shape
    assert out.dtype == jnp.float32
    np.testing.assert_allclose(np.asarray(out), np.asarray(ref),
                               rtol=5e-4, atol=5e-4)
    print("KERNEL_OK")
</pallas_src>

<mosaic_0001>
module attributes {stable_mosaic.version = 11 : i64} {
  func.func @incep_kernel(%arg0: i32, %arg1: memref<1x4x512xf32, #tpu.memory_space<vmem>>, %arg2: memref<1x512xf32, #tpu.memory_space<vmem>>, %arg3: memref<24x4xf32, #tpu.memory_space<vmem>>, %arg4: memref<24x1xf32, #tpu.memory_space<vmem>>, %arg5: memref<8x72xf32, #tpu.memory_space<vmem>>, %arg6: memref<8x1xf32, #tpu.memory_space<vmem>>, %arg7: memref<8x200xf32, #tpu.memory_space<vmem>>, %arg8: memref<8x1xf32, #tpu.memory_space<vmem>>, %arg9: memref<8x4xf32, #tpu.memory_space<vmem>>, %arg10: memref<8x1xf32, #tpu.memory_space<vmem>>, %arg11: memref<1x32x384xf32, #tpu.memory_space<vmem>>) attributes {dimension_semantics = [#tpu.dimension_semantics<parallel>], iteration_bounds = array<i64: 2>, scalar_prefetch = 0 : i64, scratch_operands = 0 : i64, tpu.core_type = #tpu.core_type<tc>, window_params = [{transform_indices = @transform_0, window_bounds = array<i64: 1, 4, 512>}, {pipeline_mode = #tpu.pipeline_mode<synchronous>, transform_indices = @transform_1, window_bounds = array<i64: 1, 512>}, {pipeline_mode = #tpu.pipeline_mode<synchronous>, transform_indices = @transform_2, window_bounds = array<i64: 24, 4>}, {pipeline_mode = #tpu.pipeline_mode<synchronous>, transform_indices = @transform_3, window_bounds = array<i64: 24, 1>}, {pipeline_mode = #tpu.pipeline_mode<synchronous>, transform_indices = @transform_4, window_bounds = array<i64: 8, 72>}, {pipeline_mode = #tpu.pipeline_mode<synchronous>, transform_indices = @transform_5, window_bounds = array<i64: 8, 1>}, {pipeline_mode = #tpu.pipeline_mode<synchronous>, transform_indices = @transform_6, window_bounds = array<i64: 8, 200>}, {pipeline_mode = #tpu.pipeline_mode<synchronous>, transform_indices = @transform_7, window_bounds = array<i64: 8, 1>}, {pipeline_mode = #tpu.pipeline_mode<synchronous>, transform_indices = @transform_8, window_bounds = array<i64: 8, 4>}, {pipeline_mode = #tpu.pipeline_mode<synchronous>, transform_indices = @transform_9, window_bounds = array<i64: 8, 1>}, {transform_indices = @transform_10, window_bounds = array<i64: 1, 32, 384>}]} {
    %c0 = arith.constant 0 : index
    %c0_0 = arith.constant 0 : index
    %0 = vector.load %arg2[%c0, %c0_0] : memref<1x512xf32, #tpu.memory_space<vmem>>, vector<1x512xf32>
    %c0_1 = arith.constant 0 : index
    %c0_2 = arith.constant 0 : index
    %c0_3 = arith.constant 0 : index
    %1 = vector.load %arg1[%c0_1, %c0_2, %c0_3] : memref<1x4x512xf32, #tpu.memory_space<vmem>>, vector<1x4x512xf32>
    %2 = vector.shape_cast %1 : vector<1x4x512xf32> to vector<4x512xf32>
    %c0_4 = arith.constant 0 : index
    %c0_5 = arith.constant 0 : index
    %3 = vector.load %arg3[%c0_4, %c0_5] : memref<24x4xf32, #tpu.memory_space<vmem>>, vector<24x4xf32>
    %cst = arith.constant dense<0.000000e+00> : vector<24x512xf32>
    %4 = tpu.matmul %3, %2, %cst {dimension_numbers = #tpu.dot_dimension_numbers<[1], [0], [0], [1], [0, 0, 1, 1], [], []>} : vector<24x4xf32>, vector<4x512xf32>, vector<24x512xf32> -> vector<24x512xf32>
    %c0_6 = arith.constant 0 : index
    %c0_7 = arith.constant 0 : index
    %5 = vector.load %arg4[%c0_6, %c0_7] : memref<24x1xf32, #tpu.memory_space<vmem>>, vector<24x1xf32>
    %6 = vector.broadcast %5 : vector<24x1xf32> to vector<24x512xf32>
    %7 = arith.addf %4, %6 : vector<24x512xf32>
    %cst_8 = arith.constant 0.000000e+00 : f32
    %8 = vector.broadcast %cst_8 : f32 to vector<24x512xf32>
    %9 = arith.maximumf %7, %8 : vector<24x512xf32>
    %10 = vector.broadcast %0 : vector<1x512xf32> to vector<24x512xf32>
    %11 = arith.mulf %9, %10 : vector<24x512xf32>
    %12 = vector.extract_strided_slice %11 {offsets = [0, 50], sizes = [8, 384], strides = [1, 1]} : vector<24x512xf32> to vector<8x384xf32>
    %13 = vector.extract_strided_slice %11 {offsets = [8, 0], sizes = [8, 512], strides = [1, 1]} : vector<24x512xf32> to vector<8x512xf32>
    %14 = vector.extract_strided_slice %11 {offsets = [16, 0], sizes = [8, 512], strides = [1, 1]} : vector<24x512xf32> to vector<8x512xf32>
    %15 = vector.extract_strided_slice %13 {offsets = [0, 25], sizes = [8, 384], strides = [1, 1]} : vector<8x512xf32> to vector<8x384xf32>
    %16 = vector.extract_strided_slice %13 {offsets = [0, 26], sizes = [8, 384], strides = [1, 1]} : vector<8x512xf32> to vector<8x384xf32>
    %17 = vector.extract_strided_slice %13 {offsets = [0, 27], sizes = [8, 384], strides = [1, 1]} : vector<8x512xf32> to vector<8x384xf32>
    %18 = vector.extract_strided_slice %13 {offsets = [0, 49], sizes = [8, 384], strides = [1, 1]} : vector<8x512xf32> to vector<8x384xf32>
    %19 = vector.extract_strided_slice %13 {offsets = [0, 50], sizes = [8, 384], strides = [1, 1]} : vector<8x512xf32> to vector<8x384xf32>
    %20 = vector.extract_strided_slice %13 {offsets = [0, 51], sizes = [8, 384], strides = [1, 1]} : vector<8x512xf32> to vector<8x384xf32>
    %21 = vector.extract_strided_slice %13 {offsets = [0, 73], sizes = [8, 384], strides = [1, 1]} : vector<8x512xf32> to vector<8x384xf32>
    %22 = vector.extract_strided_slice %13 {offsets = [0, 74], sizes = [8, 384], strides = [1, 1]} : vector<8x512xf32> to vector<8x384xf32>
    %23 = vector.extract_strided_slice %13 {offsets = [0, 75], sizes = [8, 384], strides = [1, 1]} : vector<8x512xf32> to vector<8x384xf32>
    %24 = tpu.concatenate %15, %16, %17, %18, %19, %20, %21, %22, %23 in 0 : vector<8x384xf32>, vector<8x384xf32>, vector<8x384xf32>, vector<8x384xf32>, vector<8x384xf32>, vector<8x384xf32>, vector<8x384xf32>, vector<8x384xf32>, vector<8x384xf32> -> vector<72x384xf32>
    %c0_9 = arith.constant 0 : index
    %c0_10 = arith.constant 0 : index
    %25 = vector.load %arg5[%c0_9, %c0_10] : memref<8x72xf32, #tpu.memory_space<vmem>>, vector<8x72xf32>
    %cst_11 = arith.constant dense<0.000000e+00> : vector<8x384xf32>
    %26 = tpu.matmul %25, %24, %cst_11 {dimension_numbers = #tpu.dot_dimension_numbers<[1], [0], [0], [1], [0, 0, 1, 1], [], []>} : vector<8x72xf32>, vector<72x384xf32>, vector<8x384xf32> -> vector<8x384xf32>
    %c0_12 = arith.constant 0 : index
    %c0_13 = arith.constant 0 : index
    %27 = vector.load %arg6[%c0_12, %c0_13] : memref<8x1xf32, #tpu.memory_space<vmem>>, vector<8x1xf32>
    %28 = vector.broadcast %27 : vector<8x1xf32> to vector<8x384xf32>
    %29 = arith.addf %26, %28 : vector<8x384xf32>
    %cst_14 = arith.constant 0.000000e+00 : f32
    %30 = vector.broadcast %cst_14 : f32 to vector<8x384xf32>
    %31 = arith.maximumf %29, %30 : vector<8x384xf32>
    %32 = vector.extract_strided_slice %14 {offsets = [0, 0], sizes = [8, 384], strides = [1, 1]} : vector<8x512xf32> to vector<8x384xf32>
    %33 = vector.extract_strided_slice %14 {offsets = [0, 1], sizes = [8, 384], strides = [1, 1]} : vector<8x512xf32> to vector<8x384xf32>
    %34 = vector.extract_strided_slice %14 {offsets = [0, 2], sizes = [8, 384], strides = [1, 1]} : vector<8x512xf32> to vector<8x384xf32>
    %35 = vector.extract_strided_slice %14 {offsets = [0, 3], sizes = [8, 384], strides = [1, 1]} : vector<8x512xf32> to vector<8x384xf32>
    %36 = vector.extract_strided_slice %14 {offsets = [0, 4], sizes = [8, 384], strides = [1, 1]} : vector<8x512xf32> to vector<8x384xf32>
    %37 = vector.extract_strided_slice %14 {offsets = [0, 24], sizes = [8, 384], strides = [1, 1]} : vector<8x512xf32> to vector<8x384xf32>
    %38 = vector.extract_strided_slice %14 {offsets = [0, 25], sizes = [8, 384], strides = [1, 1]} : vector<8x512xf32> to vector<8x384xf32>
    %39 = vector.extract_strided_slice %14 {offsets = [0, 26], sizes = [8, 384], strides = [1, 1]} : vector<8x512xf32> to vector<8x384xf32>
    %40 = vector.extract_strided_slice %14 {offsets = [0, 27], sizes = [8, 384], strides = [1, 1]} : vector<8x512xf32> to vector<8x384xf32>
    %41 = vector.extract_strided_slice %14 {offsets = [0, 28], sizes = [8, 384], strides = [1, 1]} : vector<8x512xf32> to vector<8x384xf32>
    %42 = vector.extract_strided_slice %14 {offsets = [0, 48], sizes = [8, 384], strides = [1, 1]} : vector<8x512xf32> to vector<8x384xf32>
    %43 = vector.extract_strided_slice %14 {offsets = [0, 49], sizes = [8, 384], strides = [1, 1]} : vector<8x512xf32> to vector<8x384xf32>
    %44 = vector.extract_strided_slice %14 {offsets = [0, 50], sizes = [8, 384], strides = [1, 1]} : vector<8x512xf32> to vector<8x384xf32>
    %45 = vector.extract_strided_slice %14 {offsets = [0, 51], sizes = [8, 384], strides = [1, 1]} : vector<8x512xf32> to vector<8x384xf32>
    %46 = vector.extract_strided_slice %14 {offsets = [0, 52], sizes = [8, 384], strides = [1, 1]} : vector<8x512xf32> to vector<8x384xf32>
    %47 = vector.extract_strided_slice %14 {offsets = [0, 72], sizes = [8, 384], strides = [1, 1]} : vector<8x512xf32> to vector<8x384xf32>
    %48 = vector.extract_strided_slice %14 {offsets = [0, 73], sizes = [8, 384], strides = [1, 1]} : vector<8x512xf32> to vector<8x384xf32>
    %49 = vector.extract_strided_slice %14 {offsets = [0, 74], sizes = [8, 384], strides = [1, 1]} : vector<8x512xf32> to vector<8x384xf32>
    %50 = vector.extract_strided_slice %14 {offsets = [0, 75], sizes = [8, 384], strides = [1, 1]} : vector<8x512xf32> to vector<8x384xf32>
    %51 = vector.extract_strided_slice %14 {offsets = [0, 76], sizes = [8, 384], strides = [1, 1]} : vector<8x512xf32> to vector<8x384xf32>
    %52 = vector.extract_strided_slice %14 {offsets = [0, 96], sizes = [8, 384], strides = [1, 1]} : vector<8x512xf32> to vector<8x384xf32>
    %53 = vector.extract_strided_slice %14 {offsets = [0, 97], sizes = [8, 384], strides = [1, 1]} : vector<8x512xf32> to vector<8x384xf32>
    %54 = vector.extract_strided_slice %14 {offsets = [0, 98], sizes = [8, 384], strides = [1, 1]} : vector<8x512xf32> to vector<8x384xf32>
    %55 = vector.extract_strided_slice %14 {offsets = [0, 99], sizes = [8, 384], strides = [1, 1]} : vector<8x512xf32> to vector<8x384xf32>
    %56 = vector.extract_strided_slice %14 {offsets = [0, 100], sizes = [8, 384], strides = [1, 1]} : vector<8x512xf32> to vector<8x384xf32>
    %57 = tpu.concatenate %32, %33, %34, %35, %36, %37, %38, %39, %40, %41, %42, %43, %44, %45, %46, %47 in 0 : vector<8x384xf32>, vector<8x384xf32>, vector<8x384xf32>, vector<8x384xf32>, vector<8x384xf32>, vector<8x384xf32>, vector<8x384xf32>, vector<8x384xf32>, vector<8x384xf32>, vector<8x384xf32>, vector<8x384xf32>, vector<8x384xf32>, vector<8x384xf32>, vector<8x384xf32>, vector<8x384xf32>, vector<8x384xf32> -> vector<128x384xf32>
    %58 = tpu.concatenate %48, %49, %50, %51, %52, %53, %54, %55, %56 in 0 : vector<8x384xf32>, vector<8x384xf32>, vector<8x384xf32>, vector<8x384xf32>, vector<8x384xf32>, vector<8x384xf32>, vector<8x384xf32>, vector<8x384xf32>, vector<8x384xf32> -> vector<72x384xf32>
    %59 = tpu.concatenate %57, %58 in 0 : vector<128x384xf32>, vector<72x384xf32> -> vector<200x384xf32>
    %c0_15 = arith.constant 0 : index
    %c0_16 = arith.constant 0 : index
    %60 = vector.load %arg7[%c0_15, %c0_16] : memref<8x200xf32, #tpu.memory_space<vmem>>, vector<8x200xf32>
    %cst_17 = arith.constant dense<0.000000e+00> : vector<8x384xf32>
    %61 = tpu.matmul %60, %59, %cst_17 {dimension_numbers = #tpu.dot_dimension_numbers<[1], [0], [0], [1], [0, 0, 1, 1], [], []>} : vector<8x200xf32>, vector<200x384xf32>, vector<8x384xf32> -> vector<8x384xf32>
    %c0_18 = arith.constant 0 : index
    %c0_19 = arith.constant 0 : index
    %62 = vector.load %arg8[%c0_18, %c0_19] : memref<8x1xf32, #tpu.memory_space<vmem>>, vector<8x1xf32>
    %63 = vector.broadcast %62 : vector<8x1xf32> to vector<8x384xf32>
    %64 = arith.addf %61, %63 : vector<8x384xf32>
    %cst_20 = arith.constant 0.000000e+00 : f32
    %65 = vector.broadcast %cst_20 : f32 to vector<8x384xf32>
    %66 = arith.maximumf %64, %65 : vector<8x384xf32>
    %67 = vector.extract_strided_slice %2 {offsets = [0, 25], sizes = [4, 384], strides = [1, 1]} : vector<4x512xf32> to vector<4x384xf32>
    %68 = vector.extract_strided_slice %2 {offsets = [0, 26], sizes = [4, 384], strides = [1, 1]} : vector<4x512xf32> to vector<4x384xf32>
    %69 = vector.extract_strided_slice %2 {offsets = [0, 27], sizes = [4, 384], strides = [1, 1]} : vector<4x512xf32> to vector<4x384xf32>
    %70 = vector.extract_strided_slice %2 {offsets = [0, 49], sizes = [4, 384], strides = [1, 1]} : vector<4x512xf32> to vector<4x384xf32>
    %71 = vector.extract_strided_slice %2 {offsets = [0, 50], sizes = [4, 384], strides = [1, 1]} : vector<4x512xf32> to vector<4x384xf32>
    %72 = vector.extract_strided_slice %2 {offsets = [0, 51], sizes = [4, 384], strides = [1, 1]} : vector<4x512xf32> to vector<4x384xf32>
    %73 = vector.extract_strided_slice %2 {offsets = [0, 73], sizes = [4, 384], strides = [1, 1]} : vector<4x512xf32> to vector<4x384xf32>
    %74 = vector.extract_strided_slice %2 {offsets = [0, 74], sizes = [4, 384], strides = [1, 1]} : vector<4x512xf32> to vector<4x384xf32>
    %75 = vector.extract_strided_slice %2 {offsets = [0, 75], sizes = [4, 384], strides = [1, 1]} : vector<4x512xf32> to vector<4x384xf32>
    %76 = arith.maximumf %67, %68 : vector<4x384xf32>
    %77 = arith.maximumf %76, %69 : vector<4x384xf32>
    %78 = arith.maximumf %77, %70 : vector<4x384xf32>
    %79 = arith.maximumf %78, %71 : vector<4x384xf32>
    %80 = arith.maximumf %79, %72 : vector<4x384xf32>
    %81 = arith.maximumf %80, %73 : vector<4x384xf32>
    %82 = arith.maximumf %81, %74 : vector<4x384xf32>
    %83 = arith.maximumf %82, %75 : vector<4x384xf32>
    %cst_21 = arith.constant 0.000000e+00 : f32
    %84 = vector.broadcast %cst_21 : f32 to vector<4x384xf32>
    %85 = arith.maximumf %83, %84 : vector<4x384xf32>
    %c0_22 = arith.constant 0 : index
    %c0_23 = arith.constant 0 : index
    %86 = vector.load %arg9[%c0_22, %c0_23] : memref<8x4xf32, #tpu.memory_space<vmem>>, vector<8x4xf32>
    %cst_24 = arith.constant dense<0.000000e+00> : vector<8x384xf32>
    %87 = tpu.matmul %86, %85, %cst_24 {dimension_numbers = #tpu.dot_dimension_numbers<[1], [0], [0], [1], [0, 0, 1, 1], [], []>} : vector<8x4xf32>, vector<4x384xf32>, vector<8x384xf32> -> vector<8x384xf32>
    %c0_25 = arith.constant 0 : index
    %c0_26 = arith.constant 0 : index
    %88 = vector.load %arg10[%c0_25, %c0_26] : memref<8x1xf32, #tpu.memory_space<vmem>>, vector<8x1xf32>
    %89 = vector.broadcast %88 : vector<8x1xf32> to vector<8x384xf32>
    %90 = arith.addf %87, %89 : vector<8x384xf32>
    %cst_27 = arith.constant 0.000000e+00 : f32
    %91 = vector.broadcast %cst_27 : f32 to vector<8x384xf32>
    %92 = arith.maximumf %90, %91 : vector<8x384xf32>
    %c0_28 = arith.constant 0 : index
    %c0_29 = arith.constant 0 : index
    %c0_30 = arith.constant 0 : index
    %93 = vector.load %arg11[%c0_28, %c0_29, %c0_30] : memref<1x32x384xf32, #tpu.memory_space<vmem>>, vector<1x8x384xf32>
    %94 = vector.shape_cast %93 : vector<1x8x384xf32> to vector<8x384xf32>
    %95 = vector.shape_cast %12 : vector<8x384xf32> to vector<1x8x384xf32>
    tpu.vector_store %arg11[%c0_28, %c0_29, %c0_30], %95 {strides = array<i32>} : memref<1x32x384xf32, #tpu.memory_space<vmem>>, vector<1x8x384xf32>,
    %c0_31 = arith.constant 0 : index
    %c8 = arith.constant 8 : index
    %c0_32 = arith.constant 0 : index
    %96 = vector.load %arg11[%c0_31, %c8, %c0_32] : memref<1x32x384xf32, #tpu.memory_space<vmem>>, vector<1x8x384xf32>
    %97 = vector.shape_cast %96 : vector<1x8x384xf32> to vector<8x384xf32>
    %98 = vector.shape_cast %31 : vector<8x384xf32> to vector<1x8x384xf32>
    tpu.vector_store %arg11[%c0_31, %c8, %c0_32], %98 {strides = array<i32>} : memref<1x32x384xf32, #tpu.memory_space<vmem>>, vector<1x8x384xf32>,
    %c0_33 = arith.constant 0 : index
    %c16 = arith.constant 16 : index
    %c0_34 = arith.constant 0 : index
    %99 = vector.load %arg11[%c0_33, %c16, %c0_34] : memref<1x32x384xf32, #tpu.memory_space<vmem>>, vector<1x8x384xf32>
    %100 = vector.shape_cast %99 : vector<1x8x384xf32> to vector<8x384xf32>
    %101 = vector.shape_cast %66 : vector<8x384xf32> to vector<1x8x384xf32>
    tpu.vector_store %arg11[%c0_33, %c16, %c0_34], %101 {strides = array<i32>} : memref<1x32x384xf32, #tpu.memory_space<vmem>>, vector<1x8x384xf32>,
    %c0_35 = arith.constant 0 : index
    %c24 = arith.constant 24 : index
    %c0_36 = arith.constant 0 : index
    %102 = vector.load %arg11[%c0_35, %c24, %c0_36] : memref<1x32x384xf32, #tpu.memory_space<vmem>>, vector<1x8x384xf32>
    %103 = vector.shape_cast %102 : vector<1x8x384xf32> to vector<8x384xf32>
    %104 = vector.shape_cast %92 : vector<8x384xf32> to vector<1x8x384xf32>
    tpu.vector_store %arg11[%c0_35, %c24, %c0_36], %104 {strides = array<i32>} : memref<1x32x384xf32, #tpu.memory_space<vmem>>, vector<1x8x384xf32>,
    return
  }
  func.func @transform_0(%arg0: i32) -> (i32, i32, i32) {
    %c0_i32 = arith.constant 0 : i32
    %c0_i32_0 = arith.constant 0 : i32
    %c0_i32_1 = arith.constant 0 : i32
    return %arg0, %c0_i32, %c0_i32_0 : i32, i32, i32
  }
  func.func @transform_1(%arg0: i32) -> (i32, i32) {
    %c0_i32 = arith.constant 0 : i32
    %c0_i32_0 = arith.constant 0 : i32
    %c0_i32_1 = arith.constant 0 : i32
    return %c0_i32, %c0_i32_0 : i32, i32
  }
  func.func @transform_2(%arg0: i32) -> (i32, i32) {
    %c0_i32 = arith.constant 0 : i32
    %c0_i32_0 = arith.constant 0 : i32
    %c0_i32_1 = arith.constant 0 : i32
    return %c0_i32, %c0_i32_0 : i32, i32
  }
  func.func @transform_3(%arg0: i32) -> (i32, i32) {
    %c0_i32 = arith.constant 0 : i32
    %c0_i32_0 = arith.constant 0 : i32
    %c0_i32_1 = arith.constant 0 : i32
    return %c0_i32, %c0_i32_0 : i32, i32
  }
  func.func @transform_4(%arg0: i32) -> (i32, i32) {
    %c0_i32 = arith.constant 0 : i32
    %c0_i32_0 = arith.constant 0 : i32
    %c0_i32_1 = arith.constant 0 : i32
    return %c0_i32, %c0_i32_0 : i32, i32
  }
  func.func @transform_5(%arg0: i32) -> (i32, i32) {
    %c0_i32 = arith.constant 0 : i32
    %c0_i32_0 = arith.constant 0 : i32
    %c0_i32_1 = arith.constant 0 : i32
    return %c0_i32, %c0_i32_0 : i32, i32
  }
  func.func @transform_6(%arg0: i32) -> (i32, i32) {
    %c0_i32 = arith.constant 0 : i32
    %c0_i32_0 = arith.constant 0 : i32
    %c0_i32_1 = arith.constant 0 : i32
    return %c0_i32, %c0_i32_0 : i32, i32
  }
  func.func @transform_7(%arg0: i32) -> (i32, i32) {
    %c0_i32 = arith.constant 0 : i32
    %c0_i32_0 = arith.constant 0 : i32
    %c0_i32_1 = arith.constant 0 : i32
    return %c0_i32, %c0_i32_0 : i32, i32
  }
  func.func @transform_8(%arg0: i32) -> (i32, i32) {
    %c0_i32 = arith.constant 0 : i32
    %c0_i32_0 = arith.constant 0 : i32
    %c0_i32_1 = arith.constant 0 : i32
    return %c0_i32, %c0_i32_0 : i32, i32
  }
  func.func @transform_9(%arg0: i32) -> (i32, i32) {
    %c0_i32 = arith.constant 0 : i32
    %c0_i32_0 = arith.constant 0 : i32
    %c0_i32_1 = arith.constant 0 : i32
    return %c0_i32, %c0_i32_0 : i32, i32
  }
  func.func @transform_10(%arg0: i32) -> (i32, i32, i32) {
    %c0_i32 = arith.constant 0 : i32
    %c0_i32_0 = arith.constant 0 : i32
    %c0_i32_1 = arith.constant 0 : i32
    return %arg0, %c0_i32, %c0_i32_0 : i32, i32, i32
  }
}

</mosaic_0001>

<bundles_post_ra>
// kernel: incep_forward.1
= control target key start
LH: loop header
LB: loop body
LE: loop exit
PB: predicated region body
PF: predicated region fallthrough
CT: control target
= control target key end

     0   :  { %s2053_s13 = smov 0   ;;  %s3197_s0 = inlined_call_operand.vmem [shape: f32[2,4,512], index: 0, kind: input, shape index: {}]   ;;  %s3198_s1 = inlined_call_operand.vmem [shape: f32[1,512], index: 1, kind: input, shape index: {}]   ;;  %s3199_s2 = inlined_call_operand.vmem [shape: f32[24,4], index: 2, kind: input, shape index: {}]   ;;  %s3200_s3 = inlined_call_operand.vmem [shape: f32[24,1], index: 3, kind: input, shape index: {}]   ;;  %s3201_s4 = inlined_call_operand.vmem [shape: f32[8,72], index: 4, kind: input, shape index: {}]   ;;  %s3202_s5 = inlined_call_operand.vmem [shape: f32[8,1], index: 5, kind: input, shape index: {}]   ;;  %s3203_s6 = inlined_call_operand.vmem [shape: f32[8,200], index: 6, kind: input, shape index: {}]   ;;  %s3204_s7 = inlined_call_operand.vmem [shape: f32[8,1], index: 7, kind: input, shape index: {}]   ;;  %s3205_s8 = inlined_call_operand.vmem [shape: f32[8,4], index: 8, kind: input, shape index: {}]   ;;  %s3206_s9 = inlined_call_operand.vmem [shape: f32[8,1], index: 9, kind: input, shape index: {}]   ;;  %s3207_s10 = inlined_call_operand.vmem [shape: f32[2,32,384], index: 10, kind: output, shape index: {}]  }
   0x1 LB: > { %s1869_s14 = sadd.s32 4294967295, %s1976_s13   ;;  %p1873_p0 = scmp.ge.s32.totalorder %s1976_s13, 1  ;;  %s1976_s13 = sphi %s2053_s13, %s20_s13  }
   0x2   : > { %p312_p1 = scmp.lt.s32.totalorder %s1976_s13, 3 }
   0x4   : > { %p313_p2 = pnand %p1873_p0, %p312_p1 }
   0x6   : > { %316 = sbr.rel (%p313_p2) target bundleno = 875 (0x36b), region = 60 }
   0xb   : > { %p350_p3 = scmp.lt.s32.totalorder %s1869_s14, 1  ;;  %v3208_v0 = vmov 0.0   ;;  %v366_v1 = vld [vmem:[%s3200_s3] sm:$0xff]  ;;  %v367_v2 = vld [vmem:[%s3200_s3 + $0x8] sm:$0xff]  ;;  %v1979_v3 = vmov 0   ;;  %v368_v4 = vld [vmem:[%s3200_s3 + $0x10] sm:$0xff]  ;;  %v586_v12 = vlaneseq }
   0xc   : > { %471 = vmatprep.mubr.f32.mxu0 %v3208_v0  ;;  %554 = vmatprep.mubr.f32.mxu1 %v3208_v0  ;;  %vm398_vm0 = vcmask 1043456   ;;  %s1980_s25 = smov 127   ;;  %v363_v9 = vld [vmem:[%s3199_s2] sm:$0xff]  ;;  %vm388_vm1 = vcmask 31744   ;;  %v364_v10 = vld [vmem:[%s3199_s2 + $0x8] sm:$0xff]  ;;  %s1981_s30 = smov 126  }
   0xd   : > { %s3300_s14 = smov (!%p350_p3, %s1869_s14), 1  ;;  %1967 = vset.pattern.permute.xlu1 %v1979_v3  ;;  %1966 = vset.pattern.permute.xlu0 %v1979_v3  ;;  %v365_v11 = vld [vmem:[%s3199_s2 + $0x10] sm:$0xff]  ;;  %s1982_s15 = smov 104   ;;  %v587_v13 = vshrl.u32 %v586_v12, 7  ;;  %v360_v17 = vld [vmem:[%s3198_s1] sm:$0xf] }
   0xe   : > { %371 = vperm.xlu1 %1967, %v366_v1   ;;  %376 = vperm.xlu0 %1966, %v367_v2   ;;  %s1898_s19 = sshll.u32 %s3300_s14, 4  ;;  %s1983_s16 = smov 103   ;;  %vm714_vm2 = vcmask 637952   ;;  %vm702_vm3 = vcmask 646144   ;;  %vm690_vm4 = vcmask 654336   ;;  %vm678_vm5 = vcmask 834560  }
   0xf   : > { %s354_s24 = scalar_lea.vmem %s3197_s0, %s1898_s19  ;;  %s1984_s17 = smov 102   ;;  %v588_v14 = vsub.s32 0, %v587_v13  ;;  %v596_v15 = vsub.s32 2, %v587_v13  ;;  %v592_v18 = vsub.s32 1, %v587_v13  ;;  %v600_v19 = vsub.s32 3, %v587_v13 }
  0x10   : > { %v2078_v5 = vld [vmem:[%s354_s24] sm:$0xff]  ;;  %v2080_v6 = vld [vmem:[%s354_s24 + $0x8] sm:$0xff]  ;;  %s1985_s18 = smov 80   ;;  %s1986_s19 = smov 79   ;;  %vm666_vm6 = vcmask 842752   ;;  %vm654_vm7 = vcmask 850944  }
  0x11   : > { %v386_v7 = vcombine.high %v2078_v5, %v2078_v5  ;;  %v387_v8 = vcombine.high %v2080_v6, %v2080_v6  ;;  %s1987_s20 = smov 78   ;;  %v2148_v23 = vrot.slane %v360_v17, %v588_v14  ;;  %v2150_v25 = vrot.slane %v360_v17, %v596_v15  ;;  %s1988_s23 = smov 101  }
  0x12   : > { %381 = vperm.xlu0 %1966, %v368_v4   ;;  %1503 = vrot.lane.b32.xlu1 %v2078_v5, %s1980_s25  ;;  %v2152_v27 = vrot.slane %v360_v17, %v592_v18  ;;  %v2154_v29 = vrot.slane %v360_v17, %v600_v19  ;;  %s1989_s24 = smov 125   ;;  %s1990_s26 = smov 56   ;;  %vm642_vm8 = vcmask 1031168   ;;  %vm1996_vm9 = vmmov 0  }
  0x13   : > { %1877 = vmatprep.subr.msk.mxu0 %vm398_vm0, %v386_v7  ;;  %1882 = vmatprep.subr.msk.mxu1 %vm398_vm0, %v387_v8  ;;  %s1991_s27 = smov 76   ;;  %s1992_s28 = smov 105   ;;  %vm630_vm10 = vcmask 1039360   ;;  %vm1100_vm11 = vcmask 826368   ;;  %vm1217_vm12 = vcmask 859136   ;;  %vm1028_vm13 = vcmask 1022976  }
  0x14   : > { %1878 = vmatpush1.msk.msra.mxu0 %vm398_vm0, %v2078_v5  ;;  %1883 = vmatpush1.msk.msra.mxu1 %vm398_vm0, %v2080_v6  ;;  %s1993_s29 = smov 77   ;;  %s1994_s11 = smov 100   ;;  %vm1043_vm14 = vcmask 1014784   ;;  %vm840_vm15 = vcmask 588800  }
  0x15   : > { %1879 = vmatmul.mubr.msk.f32.vlgmr.msra.gmra.mxu0 %vm388_vm1, %v363_v9  ;;  %1884 = vmatmul.mubr.msk.f32.vlgmr.msra.gmra.mxu1 %vm388_vm1, %v363_v9 }
  0x16   : > { %477 = vmatprep.mubr.f32.mxu0 %v3208_v0  ;;  %560 = vmatprep.mubr.f32.mxu1 %v3208_v0 }
  0x17   : > { %1505 = vrot.lane.b32.xlu0 %v2080_v6, %s1980_s25  ;;  %1516 = vrot.lane.b32.xlu1 %v2078_v5, %s1981_s30 }
  0x18   : > { %1911 = vmatprep.subr.mxu1 %v3208_v0 }
  0x19   : > { %1880 = vmatmul.mubr.msk.f32.gmra.mxu0 %vm388_vm1, %v364_v10  ;;  %1885 = vmatmul.mubr.msk.f32.gmra.mxu1 %vm388_vm1, %v364_v10 }
  0x1a   : > { %483 = vmatprep.mubr.f32.mxu0 %v3208_v0  ;;  %566 = vmatprep.mubr.f32.mxu1 %v3208_v0 }
  0x1b   : > { %1518 = vrot.lane.b32.xlu0 %v2080_v6, %s1981_s30  ;;  %1529 = vrot.lane.b32.xlu1 %v2078_v5, %s1982_s15 }
  0x1d   : > { %1881 = vmatmul.mubr.msk.f32.gmra.mxu0 %vm388_vm1, %v365_v11  ;;  %1886 = vmatmul.mubr.msk.f32.gmra.mxu1 %vm388_vm1, %v365_v11 }
  0x1e   : > { %908 = vmatprep.mubr.f32.mxu0 %v3208_v0 }
  0x1f   : > { %1531 = vrot.lane.b32.xlu0 %v2080_v6, %s1982_s15  ;;  %1542 = vrot.lane.b32.xlu1 %v2078_v5, %s1983_s16 }
  0x23   : > { %1544 = vrot.lane.b32.xlu0 %v2080_v6, %s1983_s16  ;;  %1555 = vrot.lane.b32.xlu1 %v2078_v5, %s1984_s17 }
  0x27   : > { %1557 = vrot.lane.b32.xlu0 %v2080_v6, %s1984_s17  ;;  %1568 = vrot.lane.b32.xlu1 %v2078_v5, %s1985_s18 }
  0x2b   : > { %1570 = vrot.lane.b32.xlu0 %v2080_v6, %s1985_s18  ;;  %1581 = vrot.lane.b32.xlu1 %v2078_v5, %s1986_s19 }
  0x2f   : > { %1583 = vrot.lane.b32.xlu0 %v2080_v6, %s1986_s19  ;;  %1596 = vrot.lane.b32.xlu1 %v2080_v6, %s1987_s20 }
  0x33   : > { %1594 = vrot.lane.b32.xlu0 %v2078_v5, %s1987_s20 }
  0x89   : > { %v372_v16 = vpop.permute.xlu1 %371  ;;  %v377_v38 = vpop.permute.xlu0 %376 }
  0x8d   : > { %v382_v58 = vpop.permute.xlu0 %381  ;;  %v2218_v4 = vpop.permute.xlu1 %1503 }
  0x91   : > { %v2214_v3 = vpop.permute.xlu0 %1505  ;;  %v2228_v8 = vpop.permute.xlu1 %1516 }
  0x95   : > { %v2226_v7 = vpop.permute.xlu0 %1518  ;;  %v2238_v10 = vpop.permute.xlu1 %1529 }
  0x99   : > { %v2234_v9 = vpop.permute.xlu0 %1531  ;;  %v2248_v12 = vpop.permute.xlu1 %1542 }
  0x9d   : > { %v2246_v11 = vpop.permute.xlu0 %1544  ;;  %v2258_v14 = vpop.permute.xlu1 %1555 }
  0xa1   : > { %v2254_v13 = vpop.permute.xlu0 %1557 }
  0xa5   : > { %v2266_v15 = vpop.permute.xlu0 %1570 }
  0xa9   : > { %v2274_v18 = vpop.permute.xlu0 %1583 }
  0xd5   : > { %v473_v20 = vpop.f32.mrf.mxu0  ;;  %v556_v21 = vpop.f32.mrf.mxu1 }
  0xd6   : > { %v474_v22 = vadd.f32 %v473_v20, %v372_v16  ;;  %v557_v24 = vadd.f32 %v556_v21, %v372_v16 }
  0xd7   : > { %v475_v26 = vpop.f32.mrf.mxu0  ;;  %v558_v28 = vpop.f32.mrf.mxu1 }
  0xd8   : > { %v573_v30 = vmax.f32 %v474_v22, 0.0  ;;  %v575_v31 = vmax.f32 %v557_v24, 0.0  ;;  %v476_v32 = vadd.f32 %v475_v26, %v372_v16  ;;  %v559_v33 = vadd.f32 %v558_v28, %v372_v16  ;;  %v2268_v16 = vpop.permute.xlu1 %1568  ;;  %v2286_v22 = vpop.permute.xlu0 %1594 }
  0xd9   : > { %v479_v34 = vpop.f32.mrf.mxu0  ;;  %v562_v35 = vpop.f32.mrf.mxu1  ;;  %3242 = vst [vmem:[#allocation8_spill] sm:$0xff] %v2286_v22 }
  0xda   : > { %v2157_v36 = vmul.f32 %v2148_v23, %v573_v30  ;;  %v2160_v37 = vmul.f32 %v2150_v25, %v575_v31  ;;  %v574_v39 = vmax.f32 %v476_v32, 0.0  ;;  %v576_v40 = vmax.f32 %v559_v33, 0.0 }
  0xdb   : > { %v480_v41 = vadd.f32 %v479_v34, %v377_v38  ;;  %v563_v42 = vadd.f32 %v562_v35, %v377_v38  ;;  %v481_v43 = vpop.f32.mrf.mxu0  ;;  %v564_v44 = vpop.f32.mrf.mxu1 }
  0xdc   : > { %3236 = vst [vmem:[#allocation2_spill] sm:$0xff] %v2157_v36  ;;  %3237 = vst [vmem:[#allocation3_spill] sm:$0xff] %v2160_v37  ;;  %v2163_v45 = vmul.f32 %v2152_v27, %v574_v39  ;;  %v2166_v46 = vmul.f32 %v2154_v29, %v576_v40  ;;  %v482_v47 = vadd.f32 %v481_v43, %v377_v38  ;;  %v2278_v19 = vpop.permute.xlu1 %1581 }
  0xdd   : > { %v565_v48 = vadd.f32 %v564_v44, %v377_v38  ;;  %v579_v49 = vmax.f32 %v563_v42, 0.0  ;;  %v577_v51 = vmax.f32 %v480_v41, 0.0  ;;  %v568_v57 = vpop.f32.mrf.mxu1  ;;  %v485_v60 = vpop.f32.mrf.mxu0 }
  0xde   : > { %3238 = vst [vmem:[#allocation4_spill] sm:$0xff] %v2163_v45  ;;  %3239 = vst [vmem:[#allocation5_spill] sm:$0xff] %v2166_v46  ;;  %v578_v50 = vmax.f32 %v482_v47, 0.0  ;;  %v569_v59 = vadd.f32 %v568_v57, %v382_v58  ;;  %v486_v61 = vadd.f32 %v485_v60, %v382_v58 }
  0xdf   : > { %v612_v52 = vmul.f32 %v2150_v25, %v579_v49  ;;  %v580_v54 = vmax.f32 %v565_v48, 0.0  ;;  %v610_v55 = vmul.f32 %v2148_v23, %v577_v51  ;;  %v487_v17 = vpop.f32.mrf.mxu0  ;;  %v570_v21 = vpop.f32.mrf.mxu1 }
  0xe0   : > { %v611_v53 = vmul.f32 %v2152_v27, %v578_v50  ;;  %v583_v62 = vmax.f32 %v569_v59, 0.0  ;;  %v581_v63 = vmax.f32 %v486_v61, 0.0  ;;  %v488_v20 = vadd.f32 %v487_v17, %v382_v58 }
  0xe1   : > { %710 = vrot.lane.b32.xlu0 %v612_v52, %s1987_s20  ;;  %v613_v56 = vmul.f32 %v2154_v29, %v580_v54  ;;  %v571_v24 = vadd.f32 %v570_v21, %v382_v58 }
  0xe2   : > { %708 = vrot.lane.b32.xlu1 %v611_v53, %s1987_s20  ;;  %v2205_v1 = vmul.f32 %v2150_v25, %v583_v62  ;;  %v2212_v2 = vmul.f32 %v2148_v23, %v581_v63  ;;  %v582_v23 = vmax.f32 %v488_v20, 0.0  ;;  %v2288_v25 = vpop.permute.xlu1 %1596 }
  0xe3   : > { %3243 = vst [vmem:[#allocation9_spill] sm:$0xff] %v2288_v25  ;;  %v584_v30 = vmax.f32 %v571_v24, 0.0 }
  0xe4   : > { %3240 = vst [vmem:[#allocation6_spill] sm:$0xff] %v2205_v1  ;;  %3241 = vst [vmem:[#allocation7_spill] sm:$0xff] %v2212_v2  ;;  %v2297_v28 = vmul.f32 %v2152_v27, %v582_v23 }
  0xe5   : > { %706 = vrot.lane.b32.xlu0 %v610_v55, %s1987_s20  ;;  %v2308_v33 = vmul.f32 %v2154_v29, %v584_v30 }
  0xe6   : > { %712 = vrot.lane.b32.xlu1 %v613_v56, %s1987_s20  ;;  %3244 = vst [vmem:[#allocation10_spill] sm:$0xff] %v2297_v28 }
  0xe7   : > { %3245 = vst [vmem:[#allocation11_spill] sm:$0xff] %v2308_v33 }
  0xe9   : > { %698 = vrot.lane.b32.xlu0 %v612_v52, %s1986_s19 }
  0xea   : > { %696 = vrot.lane.b32.xlu1 %v611_v53, %s1986_s19 }
  0xed   : > { %694 = vrot.lane.b32.xlu0 %v610_v55, %s1986_s19 }
  0xee   : > { %700 = vrot.lane.b32.xlu1 %v613_v56, %s1986_s19 }
  0xf1   : > { %686 = vrot.lane.b32.xlu0 %v612_v52, %s1985_s18 }
  0xf2   : > { %684 = vrot.lane.b32.xlu1 %v611_v53, %s1985_s18 }
  0xf5   : > { %682 = vrot.lane.b32.xlu0 %v610_v55, %s1985_s18 }
  0xf6   : > { %688 = vrot.lane.b32.xlu1 %v613_v56, %s1985_s18 }
  0xf9   : > { %674 = vrot.lane.b32.xlu0 %v612_v52, %s1984_s17 }
  0xfa   : > { %672 = vrot.lane.b32.xlu1 %v611_v53, %s1984_s17 }
  0xfd   : > { %670 = vrot.lane.b32.xlu0 %v610_v55, %s1984_s17 }
  0xfe   : > { %676 = vrot.lane.b32.xlu1 %v613_v56, %s1984_s17 }
 0x101   : > { %662 = vrot.lane.b32.xlu0 %v612_v52, %s1983_s16 }
 0x102   : > { %660 = vrot.lane.b32.xlu1 %v611_v53, %s1983_s16 }
 0x105   : > { %658 = vrot.lane.b32.xlu0 %v610_v55, %s1983_s16 }
 0x106   : > { %664 = vrot.lane.b32.xlu1 %v613_v56, %s1983_s16 }
 0x109   : > { %650 = vrot.lane.b32.xlu0 %v612_v52, %s1982_s15 }
 0x10a   : > { %648 = vrot.lane.b32.xlu1 %v611_v53, %s1982_s15 }
 0x10d   : > { %646 = vrot.lane.b32.xlu0 %v610_v55, %s1982_s15 }
 0x10e   : > { %652 = vrot.lane.b32.xlu1 %v613_v56, %s1982_s15 }
 0x111   : > { %638 = vrot.lane.b32.xlu0 %v612_v52, %s1981_s30 }
 0x112   : > { %636 = vrot.lane.b32.xlu1 %v611_v53, %s1981_s30 }
 0x115   : > { %634 = vrot.lane.b32.xlu0 %v610_v55, %s1981_s30 }
 0x116   : > { %640 = vrot.lane.b32.xlu1 %v613_v56, %s1981_s30 }
 0x119   : > { %626 = vrot.lane.b32.xlu0 %v612_v52, %s1980_s25 }
 0x11a   : > { %624 = vrot.lane.b32.xlu1 %v611_v53, %s1980_s25 }
 0x11d   : > { %622 = vrot.lane.b32.xlu0 %v610_v55, %s1980_s25 }
 0x11e   : > { %628 = vrot.lane.b32.xlu1 %v613_v56, %s1980_s25 }
 0x121   : > { %1096 = vrot.lane.b32.xlu0 %v2205_v1, %s1988_s23 }
 0x122   : > { %1024 = vrot.lane.b32.xlu1 %v2205_v1, %s1989_s24 }
 0x125   : > { %1092 = vrot.lane.b32.xlu0 %v2212_v2, %s1988_s23 }
 0x126   : > { %1020 = vrot.lane.b32.xlu1 %v2212_v2, %s1989_s24 }
 0x129   : > { %1082 = vrot.lane.b32.xlu0 %v2205_v1, %s1984_s17 }
 0x12a   : > { %1010 = vrot.lane.b32.xlu1 %v2205_v1, %s1981_s30 }
 0x12d   : > { %1078 = vrot.lane.b32.xlu0 %v2212_v2, %s1984_s17 }
 0x12e   : > { %1006 = vrot.lane.b32.xlu1 %v2212_v2, %s1981_s30 }
 0x131   : > { %1068 = vrot.lane.b32.xlu0 %v2205_v1, %s1983_s16 }
 0x132   : > { %996 = vrot.lane.b32.xlu1 %v2205_v1, %s1980_s25 }
 0x135   : > { %1064 = vrot.lane.b32.xlu0 %v2212_v2, %s1983_s16 }
 0x136   : > { %992 = vrot.lane.b32.xlu1 %v2212_v2, %s1980_s25 }
 0x139   : > { %1054 = vrot.lane.b32.xlu0 %v2205_v1, %s1982_s15 }
 0x13a   : > { %1194 = vrot.lane.b32.xlu1 %v2212_v2, %s1990_s26 }
 0x13d   : > { %1050 = vrot.lane.b32.xlu0 %v2212_v2, %s1982_s15 }
 0x13e   : > { %1183 = vrot.lane.b32.xlu1 %v2205_v1, %s1991_s27 }
 0x141   : > { %1213 = vrot.lane.b32.xlu0 %v2205_v1, %s1992_s28 }
 0x142   : > { %1168 = vrot.lane.b32.xlu1 %v2205_v1, %s1993_s29 }
 0x145   : > { %1209 = vrot.lane.b32.xlu0 %v2212_v2, %s1992_s28 }
 0x146   : > { %1154 = vrot.lane.b32.xlu1 %v2205_v1, %s1987_s20 }
 0x149   : > { %1198 = vrot.lane.b32.xlu0 %v2205_v1, %s1990_s26 }
 0x14a   : > { %1140 = vrot.lane.b32.xlu1 %v2205_v1, %s1986_s19 }
 0x14d   : > { %1179 = vrot.lane.b32.xlu0 %v2212_v2, %s1991_s27 }
 0x14e   : > { %1126 = vrot.lane.b32.xlu1 %v2205_v1, %s1985_s18 }
 0x151   : > { %1164 = vrot.lane.b32.xlu0 %v2212_v2, %s1993_s29 }
 0x152   : > { %1111 = vrot.lane.b32.xlu1 %v2205_v1, %s1994_s11 }
 0x153   : > { %v2294_v26 = vpop.permute.xlu0 %710 }
 0x154   : > { %v2299_v31 = vpop.permute.xlu1 %708 }
 0x155   : > { %1150 = vrot.lane.b32.xlu0 %v2212_v2, %s1987_s20 }
 0x156   : > { %1094 = vrot.lane.b32.xlu1 %v2297_v28, %s1988_s23 }
 0x157   : > { %v2305_v32 = vpop.permute.xlu0 %706 }
 0x158   : > { %v2310_v34 = vpop.permute.xlu1 %712 }
 0x159   : > { %1136 = vrot.lane.b32.xlu0 %v2212_v2, %s1986_s19 }
 0x15a   : > { %1098 = vrot.lane.b32.xlu1 %v2308_v33, %s1988_s23 }
 0x15b   : > { %v2316_v27 = vpop.permute.xlu0 %698 }
 0x15c   : > { %v2318_v35 = vpop.permute.xlu1 %696 }
 0x15d   : > { %1122 = vrot.lane.b32.xlu0 %v2212_v2, %s1985_s18 }
 0x15e   : > { %1080 = vrot.lane.b32.xlu1 %v2297_v28, %s1984_s17 }
 0x15f   : > { %v2324_v29 = vpop.permute.xlu0 %694 }
 0x160   : > { %v2326_v38 = vpop.permute.xlu1 %700 }
 0x161   : > { %1107 = vrot.lane.b32.xlu0 %v2212_v2, %s1994_s11 }
 0x162   : > { %1084 = vrot.lane.b32.xlu1 %v2308_v33, %s1984_s17 }
 0x163   : > { %v2332_v39 = vpop.permute.xlu0 %686 }
 0x164   : > { %v2334_v40 = vpop.permute.xlu1 %684 }
 0x165   : > { %1022 = vrot.lane.b32.xlu0 %v2297_v28, %s1989_s24 }
 0x166   : > { %1066 = vrot.lane.b32.xlu1 %v2297_v28, %s1983_s16 }
 0x167   : > { %v2340_v41 = vpop.permute.xlu0 %682 }
 0x168   : > { %v2342_v42 = vpop.permute.xlu1 %688 }
 0x169   : > { %1026 = vrot.lane.b32.xlu0 %v2308_v33, %s1989_s24 }
 0x16a   : > { %1070 = vrot.lane.b32.xlu1 %v2308_v33, %s1983_s16 }
 0x16b   : > { %v2348_v43 = vpop.permute.xlu0 %674 }
 0x16c   : > { %v2350_v44 = vpop.permute.xlu1 %672 }
 0x16d   : > { %1008 = vrot.lane.b32.xlu0 %v2297_v28, %s1981_s30 }
 0x16e   : > { %1052 = vrot.lane.b32.xlu1 %v2297_v28, %s1982_s15 }
 0x16f   : > { %v2356_v47 = vpop.permute.xlu0 %670 }
 0x170   : > { %v2358_v48 = vpop.permute.xlu1 %676 }
 0x171   : > { %1012 = vrot.lane.b32.xlu0 %v2308_v33, %s1981_s30  ;;  %s1997_s30 = smov 55  }
 0x172   : > { %1056 = vrot.lane.b32.xlu1 %v2308_v33, %s1982_s15 }
 0x173   : > { %v2364_v49 = vpop.permute.xlu0 %662 }
 0x174   : > { %v2366_v50 = vpop.permute.xlu1 %660 }
 0x175   : > { %994 = vrot.lane.b32.xlu0 %v2297_v28, %s1980_s25 }
 0x176   : > { %1211 = vrot.lane.b32.xlu1 %v2297_v28, %s1992_s28 }
 0x177   : > { %v2372_v51 = vpop.permute.xlu0 %658 }
 0x178   : > { %v2374_v52 = vpop.permute.xlu1 %664 }
 0x179   : > { %998 = vrot.lane.b32.xlu0 %v2308_v33, %s1980_s25  ;;  %s1995_s25 = smov 124  }
 0x17a   : > { %1215 = vrot.lane.b32.xlu1 %v2308_v33, %s1992_s28 }
 0x17b   : > { %v2380_v53 = vpop.permute.xlu0 %650 }
 0x17c   : > { %v2382_v54 = vpop.permute.xlu1 %648 }
 0x17d   : > { %1181 = vrot.lane.b32.xlu0 %v2297_v28, %s1991_s27 }
 0x17e   : > { %1196 = vrot.lane.b32.xlu1 %v2297_v28, %s1990_s26 }
 0x17f   : > { %v2388_v55 = vpop.permute.xlu0 %646 }
 0x180   : > { %v2390_v56 = vpop.permute.xlu1 %652 }
 0x181   : > { %1166 = vrot.lane.b32.xlu0 %v2297_v28, %s1993_s29 }
 0x182   : > { %1200 = vrot.lane.b32.xlu1 %v2308_v33, %s1990_s26 }
 0x183   : > { %v2396_v57 = vpop.permute.xlu0 %638 }
 0x184   : > { %v2398_v58 = vpop.permute.xlu1 %636 }
 0x185   : > { %1152 = vrot.lane.b32.xlu0 %v2297_v28, %s1987_s20 }
 0x186   : > { %1185 = vrot.lane.b32.xlu1 %v2308_v33, %s1991_s27 }
 0x187   : > { %v2404_v59 = vpop.permute.xlu0 %634 }
 0x188   : > { %v2406_v60 = vpop.permute.xlu1 %640 }
 0x189   : > { %1138 = vrot.lane.b32.xlu0 %v2297_v28, %s1986_s19 }
 0x18a   : > { %1170 = vrot.lane.b32.xlu1 %v2308_v33, %s1993_s29  ;;  %s1937_s29 = smul.u32 96, %s3300_s14 }
 0x18b   : > { %v2412_v61 = vpop.permute.xlu0 %626 }
 0x18c   : > { %v2414_v62 = vpop.permute.xlu1 %624 }
 0x18d   : > { %1124 = vrot.lane.b32.xlu0 %v2297_v28, %s1985_s18 }
 0x18e   : > { %1156 = vrot.lane.b32.xlu1 %v2308_v33, %s1987_s20 }
 0x18f   : > { %v2420_v63 = vpop.permute.xlu0 %622 }
 0x190   : > { %v2422_v17 = vpop.permute.xlu1 %628 }
 0x191   : > { %1109 = vrot.lane.b32.xlu0 %v2297_v28, %s1994_s11 }
 0x192   : > { %1142 = vrot.lane.b32.xlu1 %v2308_v33, %s1986_s19 }
 0x193   : > { %v2428_v20 = vpop.permute.xlu0 %1096 }
 0x194   : > { %v2430_v21 = vpop.permute.xlu1 %1024 }
 0x195   : > { %1113 = vrot.lane.b32.xlu0 %v2308_v33, %s1994_s11 }
 0x196   : > { %1128 = vrot.lane.b32.xlu1 %v2308_v33, %s1985_s18 }
 0x197   : > { %v2436_v23 = vpop.permute.xlu0 %1092 }
 0x198   : > { %v2438_v24 = vpop.permute.xlu1 %1020 }
 0x199   : > { %1039 = vrot.lane.b32.xlu0 %v2205_v1, %s1995_s25 }
 0x19a   : > { %1037 = vrot.lane.b32.xlu1 %v2297_v28, %s1995_s25  ;;  %v705_v28 = vsel %vm702_vm3, %v2316_v27, %v2326_v38 }
 0x19b   : > { %v2442_v30 = vpop.permute.xlu0 %1082 }
 0x19c   : > { %v2444_v0 = vpop.permute.xlu1 %1010 }
 0x19d   : > { %1041 = vrot.lane.b32.xlu0 %v2308_v33, %s1995_s25  ;;  %v716_v33 = vsel %vm714_vm2, %v2299_v31, %v2294_v26 }
 0x19e   : > { %1035 = vrot.lane.b32.xlu1 %v2212_v2, %s1995_s25 }
 0x19f   : > { %v2448_v46 = vpop.permute.xlu0 %1078 }
 0x1a0   : > { %v2450_v45 = vpop.permute.xlu1 %1006 }
 0x1a1   : > { %731 = vrot.lane.b32.xlu0 %v2422_v17, %s1983_s16 }
 0x1a2   : > { %787 = vrot.lane.b32.xlu1 %v2310_v34, %s1983_s16 }
 0x1a3   : > { %v2456_v37 = vpop.permute.xlu0 %1068 }
 0x1a4   : > { %v2458_v36 = vpop.permute.xlu1 %996 }
 0x1a5   : > { %783 = vrot.lane.b32.xlu0 %v716_v33, %s1983_s16  ;;  %v703_v33 = vsel %vm702_vm3, %v2324_v29, %v2318_v35 }
 0x1a6   : > { %779 = vrot.lane.b32.xlu1 %v2326_v38, %s1983_s16 }
 0x1a7   : > { %v2466_v1 = vpop.permute.xlu0 %1064 }
 0x1a8   : > { %v2468_v2 = vpop.permute.xlu1 %992 }
 0x1a9   : > { %3246 = vst [vmem:[#allocation12_spill] sm:$0xff] %v2468_v2  ;;  %777 = vrot.lane.b32.xlu0 %v705_v28, %s1983_s16  ;;  %v693_v2 = vsel %vm690_vm4, %v2332_v39, %v2342_v42 }
 0x1aa   : > { %771 = vrot.lane.b32.xlu1 %v2342_v42, %s1983_s16 }
 0x1ab   : > { %v2476_v25 = vpop.permute.xlu0 %1054 }
 0x1ac   : > { %v2481_v22 = vpop.permute.xlu1 %1194 }
 0x1ad   : > { %3247 = vst [vmem:[#allocation13_spill] sm:$0xff] %v2481_v22  ;;  %773 = vrot.lane.b32.xlu0 %v703_v33, %s1983_s16  ;;  %v691_v33 = vsel %vm690_vm4, %v2340_v41, %v2334_v40 }
 0x1ae   : > { %763 = vrot.lane.b32.xlu1 %v2358_v48, %s1983_s16 }
 0x1af   : > { %v2486_v38 = vpop.permute.xlu0 %1050 }
 0x1b0   : > { %v2488_v28 = vpop.permute.xlu1 %1183 }
 0x1b1   : > { %3248 = vst [vmem:[#allocation14_spill] sm:$0xff] %v2488_v28  ;;  %769 = vrot.lane.b32.xlu0 %v693_v2, %s1983_s16  ;;  %v681_v28 = vsel %vm678_vm5, %v2348_v43, %v2358_v48 }
 0x1b2   : > { %755 = vrot.lane.b32.xlu1 %v2374_v52, %s1983_s16 }
 0x1b3   : > { %v2496_v29 = vpop.permute.xlu0 %1213 }
 0x1b4   : > { %v2501_v22 = vpop.permute.xlu1 %1168 }
 0x1b5   : > { %3249 = vst [vmem:[#allocation15_spill] sm:$0xff] %v2501_v22  ;;  %765 = vrot.lane.b32.xlu0 %v691_v33, %s1983_s16  ;;  %v679_v33 = vsel %vm678_vm5, %v2356_v47, %v2350_v44  ;;  %v715_v47 = vsel %vm714_vm2, %v2305_v32, %v2299_v31  ;;  %v704_v31 = vsel %vm702_vm3, %v2318_v35, %v2316_v27 }
 0x1b6   : > { %747 = vrot.lane.b32.xlu1 %v2390_v56, %s1983_s16  ;;  %v655_v35 = vsel %vm654_vm7, %v2388_v55, %v2382_v54 }
 0x1b7   : > { %v2506_v42 = vpop.permute.xlu0 %1209 }
 0x1b8   : > { %v2508_v2 = vpop.permute.xlu1 %1154 }
 0x1b9   : > { %3250 = vst [vmem:[#allocation16_spill] sm:$0xff] %v2508_v2  ;;  %761 = vrot.lane.b32.xlu0 %v681_v28, %s1983_s16  ;;  %v717_v2 = vsel %vm714_vm2, %v2294_v26, %v2310_v34  ;;  %v2548_v34 = vsel %vm666_vm6, %v2372_v51, %v2366_v50  ;;  %v692_v51 = vsel %vm690_vm4, %v2334_v40, %v2332_v39 }
 0x1ba   : > { %739 = vrot.lane.b32.xlu1 %v2406_v60, %s1983_s16  ;;  %v644_v40 = vsel %vm642_vm8, %v2398_v58, %v2396_v57 }
 0x1bb   : > { %v2516_v41 = vpop.permute.xlu0 %1198 }
 0x1bc   : > { %3251 = vst [vmem:[#allocation17_spill] sm:$0xff] %v2516_v41  ;;  %v2521_v22 = vpop.permute.xlu1 %1140  ;;  %v2535_v41 = vsel %vm666_vm6, %v2366_v50, %v2364_v49  ;;  %v656_v50 = vsel %vm654_vm7, %v2382_v54, %v2380_v53  ;;  %v2589_v54 = vsel %vm666_vm6, %v2364_v49, %v2374_v52  ;;  %v657_v49 = vsel %vm654_vm7, %v2380_v53, %v2390_v56 }
 0x1bd   : > { %757 = vrot.lane.b32.xlu0 %v679_v33, %s1983_s16  ;;  %v631_v53 = vsel %vm630_vm10, %v2420_v63, %v2414_v62 }
 0x1be   : > { %785 = vrot.lane.b32.xlu1 %v717_v2, %s1983_s16 }
 0x1bf   : > { %v2528_v48 = vpop.permute.xlu0 %1179 }
 0x1c0   : > { %v2530_v28 = vpop.permute.xlu1 %1126 }
 0x1c1   : > { %751 = vrot.lane.b32.xlu0 %v2535_v41, %s1983_s16 }
 0x1c2   : > { %781 = vrot.lane.b32.xlu1 %v715_v47, %s1983_s16 }
 0x1c3   : > { %v2543_v26 = vpop.permute.xlu0 %1164 }
 0x1c4   : > { %v2550_v2 = vpop.permute.xlu1 %1111 }
 0x1c5   : > { %3252 = vst [vmem:[#allocation18_spill] sm:$0xff] %v2550_v2  ;;  %749 = vrot.lane.b32.xlu0 %v2548_v34, %s1983_s16 }
 0x1c6   : > { %775 = vrot.lane.b32.xlu1 %v704_v31, %s1983_s16  ;;  %v680_v31 = vsel %vm678_vm5, %v2350_v44, %v2348_v43  ;;  %v643_v44 = vsel %vm642_vm8, %v2404_v59, %v2398_v58  ;;  %v632_v58 = vsel %vm630_vm10, %v2414_v62, %v2412_v61  ;;  %v645_v59 = vsel %vm642_vm8, %v2396_v57, %v2406_v60 }
 0x1c7   : > { %v2558_v32 = vpop.permute.xlu0 %1150 }
 0x1c8   : > { %v2560_v33 = vpop.permute.xlu1 %1094 }
 0x1c9   : > { %743 = vrot.lane.b32.xlu0 %v656_v50, %s1983_s16 }
 0x1ca   : > { %767 = vrot.lane.b32.xlu1 %v692_v51, %s1983_s16  ;;  %v3255_v51 = vmov 0.0  }
 0x1cb   : > { %v2570_v27 = vpop.permute.xlu0 %1136  ;;  %1929 = vmatprep.mubr.msk.f32.mxu1 %vm1996_vm9, %v3255_v51 }
 0x1cc   : > { %v1099_v47 = vpop.permute.xlu1 %1098 }
 0x1cd   : > { %741 = vrot.lane.b32.xlu0 %v655_v35, %s1983_s16  ;;  %v2631_v60 = vsel %vm1100_vm11, %v2428_v20, %v1099_v47 }
 0x1ce   : > { %759 = vrot.lane.b32.xlu1 %v680_v31, %s1983_s16  ;;  %3256 = vst [vmem:[#allocation21_spill] sm:$0xff] %v2631_v60 }
 0x1cf   : > { %v2580_v50 = vpop.permute.xlu0 %1122 }
 0x1d0   : > { %3253 = vst [vmem:[#allocation19_spill] sm:$0xff] %v2580_v50  ;;  %v1081_v39 = vpop.permute.xlu1 %1080 }
 0x1d1   : > { %735 = vrot.lane.b32.xlu0 %v644_v40, %s1983_s16  ;;  %v633_v40 = vsel %vm630_vm10, %v2412_v61, %v2422_v17  ;;  %v2640_v61 = vsel %vm678_vm5, %v1081_v39, %v2442_v30 }
 0x1d2   : > { %753 = vrot.lane.b32.xlu1 %v2589_v54, %s1983_s16  ;;  %3257 = vst [vmem:[#allocation22_spill] sm:$0xff] %v2640_v61 }
 0x1d3   : > { %v2593_v43 = vpop.permute.xlu0 %1107 }
 0x1d4   : > { %3254 = vst [vmem:[#allocation20_spill] sm:$0xff] %v2593_v43  ;;  %v2598_v55 = vpop.permute.xlu1 %1084 }
 0x1d5   : > { %733 = vrot.lane.b32.xlu0 %v643_v44, %s1983_s16 }
 0x1d6   : > { %745 = vrot.lane.b32.xlu1 %v657_v49, %s1983_s16 }
 0x1d7   : > { %v2607_v52 = vpop.permute.xlu0 %1022 }
 0x1d8   : > { %v1067_v35 = vpop.permute.xlu1 %1066 }
 0x1d9   : > { %727 = vrot.lane.b32.xlu0 %v632_v58, %s1983_s16  ;;  %v2650_v58 = vsel %vm678_vm5, %v2448_v46, %v1081_v39 }
 0x1da   : > { %737 = vrot.lane.b32.xlu1 %v645_v59, %s1983_s16  ;;  %3258 = vst [vmem:[#allocation23_spill] sm:$0xff] %v2650_v58 }
 0x1db   : > { %v2617_v31 = vpop.permute.xlu0 %1026 }
 0x1dc   : > { %v1071_v56 = vpop.permute.xlu1 %1070 }
 0x1dd   : > { %725 = vrot.lane.b32.xlu0 %v631_v53, %s1983_s16  ;;  %v2661_v53 = vsel %vm666_vm6, %v1067_v35, %v2456_v37 }
 0x1de   : > { %729 = vrot.lane.b32.xlu1 %v633_v40, %s1983_s16  ;;  %3259 = vst [vmem:[#allocation24_spill] sm:$0xff] %v2661_v53  ;;  %v2672_v40 = vsel %vm666_vm6, %v2466_v1, %v1067_v35  ;;  %v2691_v1 = vsel %vm1100_vm11, %v2560_v33, %v2428_v20  ;;  %v1508_v20 = vrot.slane %v2214_v3, 4 }
 0x1df   : > { %v2627_v44 = vpop.permute.xlu0 %1008  ;;  %3260 = vst [vmem:[#allocation25_spill] sm:$0xff] %v2672_v40  ;;  %3262 = vst [vmem:[#allocation27_spill] sm:$0xff] %v2691_v1 }
 0x1e0   : > { %v1053_v57 = vpop.permute.xlu1 %1052 }
 0x1e1   : > { %1289 = vrot.lane.b32.xlu0 %v2631_v60, %s1997_s30  ;;  %v2701_v60 = vsel %vm654_vm7, %v2486_v38, %v1053_v57 }
 0x1e2   : > { %1291 = vrot.lane.b32.xlu1 %v1099_v47, %s1997_s30  ;;  %3263 = vst [vmem:[#allocation28_spill] sm:$0xff] %v2701_v60 }
 0x1e3   : > { %v2636_v62 = vpop.permute.xlu0 %1012 }
 0x1e4   : > { %v1057_v63 = vpop.permute.xlu1 %1056 }
 0x1e5   : > { %1279 = vrot.lane.b32.xlu0 %v2640_v61, %s1997_s30 }
 0x1e6   : > { %1283 = vrot.lane.b32.xlu1 %v2598_v55, %s1997_s30 }
 0x1e7   : > { %v2646_v17 = vpop.permute.xlu0 %994 }
 0x1e8   : > { %v1212_v49 = vpop.permute.xlu1 %1211 }
 0x1e9   : > { %1277 = vrot.lane.b32.xlu0 %v2650_v58, %s1997_s30 }
 0x1ea   : > { %1275 = vrot.lane.b32.xlu1 %v1071_v56, %s1997_s30 }
 0x1eb   : > { %v2655_v47 = vpop.permute.xlu0 %998 }
 0x1ec   : > { %v2657_v59 = vpop.permute.xlu1 %1215 }
 0x1ed   : > { %1271 = vrot.lane.b32.xlu0 %v2661_v53, %s1997_s30  ;;  %v2684_v53 = vsel %vm654_vm7, %v1053_v57, %v2476_v25  ;;  %v1219_v57 = vsel %vm1217_vm12, %v1212_v49, %v2496_v29 }
 0x1ee   : > { %1267 = vrot.lane.b32.xlu1 %v1057_v63, %s1997_s30  ;;  %3261 = vst [vmem:[#allocation26_spill] sm:$0xff] %v2684_v53 }
 0x1ef   : > { %v2666_v46 = vpop.permute.xlu0 %1181 }
 0x1f0   : > { %v2668_v39 = vpop.permute.xlu1 %1196 }
 0x1f1   : > { %1269 = vrot.lane.b32.xlu0 %v2672_v40, %s1997_s30 }
 0x1f2   : > { %1259 = vrot.lane.b32.xlu1 %v2657_v59, %s1997_s30 }
 0x1f3   : > { %v2678_v58 = vpop.permute.xlu0 %1166 }
 0x1f4   : > { %v2680_v61 = vpop.permute.xlu1 %1200 }
 0x1f5   : > { %1263 = vrot.lane.b32.xlu0 %v2684_v53, %s1997_s30  ;;  %v2708_v53 = vsel %vm1100_vm11, %v2436_v23, %v2560_v33  ;;  %v2724_v23 = vsel %vm678_vm5, %v2442_v30, %v2598_v55  ;;  %v2742_v55 = vsel %vm666_vm6, %v2456_v37, %v1071_v56  ;;  %v2759_v37 = vsel %vm1028_vm13, %v2607_v52, %v2430_v21 }
 0x1f6   : > { %1287 = vrot.lane.b32.xlu1 %v2691_v1, %s1997_s30  ;;  %3264 = vst [vmem:[#allocation29_spill] sm:$0xff] %v2708_v53  ;;  %v1507_v1 = vrot.slane %v2218_v4, 4  ;;  %3265 = vst [vmem:[#allocation30_spill] sm:$0xff] %v2724_v23 }
 0x1f7   : > { %v2695_v35 = vpop.permute.xlu0 %1152  ;;  %3267 = vst [vmem:[#allocation32_spill] sm:$0xff] %v2759_v37 }
 0x1f8   : > { %v2697_v40 = vpop.permute.xlu1 %1185  ;;  %v1509_v33 = vsel %vm398_vm0, %v1507_v1, %v1508_v20 }
 0x1f9   : > { %1261 = vrot.lane.b32.xlu0 %v2701_v60, %s1997_s30  ;;  %v1521_v60 = vrot.slane %v2226_v7, 4  ;;  %v1510_v30 = vsel %vm630_vm10, %v2218_v4, %v1509_v33  ;;  %v1511_v4 = vsel %vm630_vm10, %v2214_v3, %v1508_v20  ;;  %v1546_v20 = vrot.slane %v2248_v12, 4 }
 0x1fa   : > { %1285 = vrot.lane.b32.xlu1 %v2708_v53, %s1997_s30  ;;  %v1520_v53 = vrot.slane %v2228_v8, 4 }
 0x1fb   : > { %v2714_v43 = vpop.permute.xlu0 %1138 }
 0x1fc   : > { %v2716_v38 = vpop.permute.xlu1 %1170  ;;  %v1522_v1 = vsel %vm398_vm0, %v1520_v53, %v1521_v60  ;;  %v2767_v53 = vsel %vm654_vm7, %v2476_v25, %v1057_v63  ;;  %v2784_v25 = vsel %vm1028_vm13, %v2438_v24, %v2607_v52  ;;  %v1559_v63 = vrot.slane %v2258_v14, 4 }
 0x1fd   : > { %1255 = vrot.lane.b32.xlu0 %v1219_v57, %s1997_s30  ;;  %v1218_v57 = vsel %vm1217_vm12, %v2506_v42, %v1212_v49  ;;  %v1514_v49 = vmax.f32 %v2078_v5, %v1510_v30  ;;  %v1523_v56 = vsel %vm642_vm8, %v2228_v8, %v1522_v1  ;;  %v1547_v5 = vrot.slane %v2246_v11, 4 }
 0x1fe   : > { %1281 = vrot.lane.b32.xlu1 %v2724_v23, %s1997_s30  ;;  %v1534_v23 = vrot.slane %v2234_v9, 4  ;;  %v1524_v8 = vsel %vm642_vm8, %v2226_v7, %v1521_v60  ;;  %v1560_v60 = vrot.slane %v2254_v13, 4 }
 0x1ff   : > { %v2731_v2 = vpop.permute.xlu0 %1124  ;;  %v1527_v1 = vmax.f32 %v1514_v49, %v1523_v56  ;;  %v1548_v7 = vsel %vm398_vm0, %v1546_v20, %v1547_v5  ;;  %v2811_v56 = vsel %vm1028_vm13, %v2430_v21, %v2617_v31  ;;  %v1572_v20 = vrot.slane %v2268_v16, 4 }
 0x200   : > { %3266 = vst [vmem:[#allocation31_spill] sm:$0xff] %v2731_v2  ;;  %v2733_v50 = vpop.permute.xlu1 %1156  ;;  %v1533_v2 = vrot.slane %v2238_v10, 4 }
 0x201   : > { %1253 = vrot.lane.b32.xlu0 %v1218_v57, %s1997_s30  ;;  %v1515_v57 = vmax.f32 %v2080_v6, %v1511_v4  ;;  %v1220_v6 = vsel %vm1217_vm12, %v2496_v29, %v2657_v59  ;;  %v2802_v29 = vsel %vm642_vm8, %v2627_v44, %v2444_v0  ;;  %v1549_v59 = vsel %vm666_vm6, %v2248_v12, %v1548_v7 }
 0x202   : > { %1273 = vrot.lane.b32.xlu1 %v2742_v55, %s1997_s30  ;;  %v1535_v3 = vsel %vm398_vm0, %v1533_v2, %v1534_v23 }
 0x203   : > { %v2749_v42 = vpop.permute.xlu0 %1109  ;;  %v1536_v2 = vsel %vm654_vm7, %v2238_v10, %v1535_v3  ;;  %v1528_v24 = vmax.f32 %v1515_v57, %v1524_v8  ;;  %v1537_v10 = vsel %vm654_vm7, %v2234_v9, %v1534_v23  ;;  %v1561_v23 = vsel %vm398_vm0, %v1559_v63, %v1560_v60 }
 0x204   : > { %v2754_v33 = vpop.permute.xlu1 %1142  ;;  %v1540_v4 = vmax.f32 %v1527_v1, %v1536_v2  ;;  %v1573_v3 = vrot.slane %v2266_v15, 4  ;;  %v1550_v8 = vsel %vm666_vm6, %v2246_v11, %v1547_v5  ;;  %v1562_v7 = vsel %vm678_vm5, %v2258_v14, %v1561_v23  ;;  %v3268_v23 = vld [vmem:[#allocation8_spill] sm:$0xff] }
 0x205   : > { %1247 = vrot.lane.b32.xlu0 %v2759_v37, %s1997_s30  ;;  %v1541_v12 = vmax.f32 %v1528_v24, %v1537_v10  ;;  %v2841_v11 = vsel %vm642_vm8, %v2444_v0, %v2636_v62  ;;  %v1586_v24 = vrot.slane %v2274_v18, 4  ;;  %v2855_v0 = vsel %vm630_vm10, %v2646_v17, %v2458_v36 }
 0x206   : > { %1265 = vrot.lane.b32.xlu1 %v2767_v53, %s1997_s30  ;;  %v1553_v1 = vmax.f32 %v1540_v4, %v1549_v59  ;;  %v1574_v5 = vsel %vm398_vm0, %v1572_v20, %v1573_v3  ;;  %v1598_v20 = vrot.slane %v3268_v23, 4  ;;  %vm1187_vm7 = vcmask 621568  }
 0x207   : > { %v2775_v30 = vpop.permute.xlu0 %1113  ;;  %v1554_v14 = vmax.f32 %v1541_v12, %v1550_v8  ;;  %v3269_v12 = vld [vmem:[#allocation9_spill] sm:$0xff]  ;;  %v1576_v8 = vsel %vm690_vm4, %v2266_v15, %v1573_v3 }
 0x208   : > { %v2779_v37 = vpop.permute.xlu1 %1128  ;;  %v1566_v10 = vmax.f32 %v1553_v1, %v1562_v7 }
 0x209   : > { %1245 = vrot.lane.b32.xlu0 %v2784_v25, %s1997_s30 }
 0x20a   : > { %1257 = vrot.lane.b32.xlu1 %v1220_v6, %s1997_s30  ;;  %v2829_v6 = vsel %vm642_vm8, %v2450_v45, %v2627_v44  ;;  %v1585_v45 = vrot.slane %v2278_v19, 4  ;;  %vm1172_vm8 = vcmask 629760  }
 0x20b   : > { %v1040_v52 = vpop.permute.xlu0 %1039 }
 0x20c   : > { %v1038_v49 = vpop.permute.xlu1 %1037  ;;  %v1587_v59 = vsel %vm398_vm0, %v1585_v45, %v1586_v24  ;;  %v2878_v45 = vsel %vm630_vm10, %v2458_v36, %v2655_v47  ;;  %v3271_v36 = vld [vmem:[#allocation10_spill] sm:$0xff] }
 0x20d   : > { %1239 = vrot.lane.b32.xlu0 %v2802_v29, %s1997_s30  ;;  %v2814_v9 = vsel %vm1043_vm14, %v1038_v49, %v1040_v52 }
 0x20e   : > { %1249 = vrot.lane.b32.xlu1 %v2811_v56, %s1997_s30 }
 0x20f   : > { %v1042_v57 = vpop.permute.xlu0 %1041 }
 0x210   : > { %v2824_v21 = vsel %vm1043_vm14, %v1040_v52, %v1042_v57  ;;  %v1036_v2 = vpop.permute.xlu1 %1035  ;;  %v1563_v52 = vsel %vm678_vm5, %v2254_v13, %v1560_v60  ;;  %v1599_v57 = vrot.slane %v3269_v12, 4  ;;  %vm1202_vm5 = vcmask 457728  }
 0x211   : > { %v2834_v63 = vsel %vm1043_vm14, %v1036_v2, %v1038_v49  ;;  %1237 = vrot.lane.b32.xlu0 %v2829_v6, %s1997_s30  ;;  %v1575_v49 = vsel %vm690_vm4, %v2268_v16, %v1574_v5  ;;  %v1567_v13 = vmax.f32 %v1554_v14, %v1563_v52  ;;  %v3270_v16 = vld [vmem:[#allocation12_spill] sm:$0xff]  ;;  %v1588_v5 = vsel %vm702_vm3, %v2278_v19, %v1587_v59 }
 0x212   : > { %1241 = vrot.lane.b32.xlu1 %v2841_v11, %s1997_s30  ;;  %v1579_v1 = vmax.f32 %v1566_v10, %v1575_v49  ;;  %v2871_v7 = vsel %vm630_vm10, %v3270_v16, %v2646_v17  ;;  %v1600_v15 = vsel %vm398_vm0, %v1598_v20, %v1599_v57  ;;  %v1589_v17 = vsel %vm702_vm3, %v2274_v18, %v1586_v24  ;;  %v3272_v18 = vld [vmem:[#allocation7_spill] sm:$0xff]  ;;  %v3273_v24 = vld [vmem:[#allocation6_spill] sm:$0xff] }
 0x213   : > { %v2848_v44 = vpop.permute.xlu0 %731  ;;  %v1601_v52 = vsel %vm714_vm2, %v3268_v23, %v1600_v15  ;;  %v1602_v59 = vsel %vm714_vm2, %v3269_v12, %v1599_v57  ;;  %vm1115_vm10 = vcmask 818176  }
 0x214   : > { %v788_v4 = vpop.permute.xlu1 %787  ;;  %v1592_v14 = vmax.f32 %v1579_v1, %v1588_v5 }
 0x215   : > { %1231 = vrot.lane.b32.xlu0 %v2855_v0, %s1997_s30 }
 0x216   : > { %1251 = vrot.lane.b32.xlu1 %v2617_v31, %s1997_s30  ;;  %v1580_v31 = vmax.f32 %v1567_v13, %v1576_v8  ;;  %v1605_v13 = vmax.f32 %v1592_v14, %v1601_v52 }
 0x217   : > { %v784_v60 = vpop.permute.xlu0 %783 }
 0x218   : > { %v780_v2 = vpop.permute.xlu1 %779  ;;  %v1593_v10 = vmax.f32 %v1580_v31, %v1589_v17  ;;  %v1607_v16 = vmax.f32 %v1605_v13, 0.0 }
 0x219   : > { %1229 = vrot.lane.b32.xlu0 %v2871_v7, %s1997_s30 }
 0x21a   : > { %1233 = vrot.lane.b32.xlu1 %v2878_v45, %s1997_s30  ;;  %v1606_v23 = vmax.f32 %v1593_v10, %v1602_v59  ;;  %v1618_v15 = vcombine.high %v1607_v16, %v1607_v16  ;;  %v719_v10 = vld [vmem:[%s3202_s5] sm:$0xff] }
 0x21b   : > { %v778_v3 = vpop.permute.xlu0 %777 }
 0x21c   : > { %v772_v19 = vpop.permute.xlu1 %771  ;;  %v1608_v12 = vmax.f32 %v1606_v23, 0.0 }
 0x21d   : > { %1223 = vrot.lane.b32.xlu0 %v3271_v36, %s1997_s30 }
 0x21e   : > { %1243 = vrot.lane.b32.xlu1 %v2636_v62, %s1997_s30  ;;  %v3274_v62 = vld [vmem:[#allocation11_spill] sm:$0xff]  ;;  %v1619_v31 = vcombine.high %v1608_v12, %v1608_v12 }
 0x21f   : > { %v774_v49 = vpop.permute.xlu0 %773 }
 0x220   : > { %v764_v20 = vpop.permute.xlu1 %763 }
 0x221   : > { %1221 = vrot.lane.b32.xlu0 %v3272_v18, %s1997_s30 }
 0x222   : > { %1225 = vrot.lane.b32.xlu1 %v3273_v24, %s1997_s30 }
 0x223   : > { %v770_v8 = vpop.permute.xlu0 %769 }
 0x224   : > { %v2899_v1 = vpop.permute.xlu1 %755 }
 0x225   : > { %1227 = vrot.lane.b32.xlu0 %v3274_v62, %s1997_s30  ;;  %v809_v62 = vsel %vm666_vm6, %v778_v3, %v780_v2 }
 0x226   : > { %1235 = vrot.lane.b32.xlu1 %v2655_v47, %s1997_s30  ;;  %v1350_v47 = vld [vmem:[%s3204_s7] sm:$0xff]  ;;  %s3177_s30 = scalar_lea.vmem %s3207_s10, %s1937_s29 }
 0x227   : > { %v766_v57 = vpop.permute.xlu0 %765 }
 0x228   : > { %v2905_v5 = vpop.permute.xlu1 %747 }
 0x229   : > { %1624 = vrot.lane.b32.xlu0 %v1608_v12, %s1983_s16  ;;  %v1610_v12 = vld [vmem:[%s3206_s9] sm:$0xff] }
 0x22a   : > { %1622 = vrot.lane.b32.xlu1 %v1618_v15, %s1983_s16 }
 0x22b   : > { %v762_v17 = vpop.permute.xlu0 %761 }
 0x22c   : > { %v2909_v14 = vpop.permute.xlu1 %739 }
 0x22d   : > { %1626 = vrot.lane.b32.xlu0 %v1619_v31, %s1983_s16 }
 0x22e   : > { %1620 = vrot.lane.b32.xlu1 %v1607_v16, %s1983_s16 }
 0x22f   : > { %v758_v52 = vpop.permute.xlu0 %757 }
 0x230   : > { %v786_v59 = vpop.permute.xlu1 %785 }
 0x231   : > { %v812_v13 = vsel %vm666_vm6, %v786_v59, %v788_v4  ;;  %1353 = vperm.xlu0 %1966, %v1350_v47   ;;  %v811_v23 = vsel %vm666_vm6, %v784_v60, %v786_v59  ;;  %v3275_v4 = vld [vmem:[#allocation2_spill] sm:$0xff]  ;;  %v806_v47 = vsel %vm666_vm6, %v770_v8, %v772_v19  ;;  %v3277_v19 = vld [vmem:[#allocation4_spill] sm:$0xff] }
 0x232   : > { %1912 = vmatpush3.msra.mxu1 %v812_v13  ;;  %722 = vperm.xlu1 %1967, %v719_v10   ;;  %v803_v10 = vsel %vm666_vm6, %v762_v17, %v764_v20 }
 0x233   : > { %858 = vmatprep.subr.mxu0 %v811_v23  ;;  %v752_v16 = vpop.permute.xlu0 %751  ;;  %1913 = vmatprep.subr.mxu1 %v3255_v51 }
 0x234   : > { %v782_v15 = vpop.permute.xlu1 %781  ;;  %1914 = vmatpush3.msra.mxu1 %v809_v62 }
 0x235   : > { %v810_v31 = vsel %vm666_vm6, %v782_v15, %v784_v60  ;;  %1788 = vrot.lane.b32.xlu0 %v3275_v4, %s1987_s20  ;;  %1915 = vmatprep.subr.mxu1 %v3255_v51  ;;  %v3276_v60 = vld [vmem:[#allocation3_spill] sm:$0xff] }
 0x236   : > { %1613 = vperm.xlu1 %1967, %v1610_v12   ;;  %859 = vmatpush1.msra.mxu0 %v810_v31 }
 0x237   : > { %1916 = vmatpush3.msra.mxu1 %v806_v47  ;;  %v750_v2 = vpop.permute.xlu0 %749 }
 0x238   : > { %1917 = vmatprep.subr.mxu1 %v3255_v51  ;;  %v776_v59 = vpop.permute.xlu1 %775 }
 0x239   : > { %v807_v13 = vsel %vm666_vm6, %v774_v49, %v776_v59  ;;  %1918 = vmatpush3.msra.mxu1 %v803_v10  ;;  %1792 = vrot.lane.b32.xlu0 %v3276_v60, %s1987_s20  ;;  %v808_v23 = vsel %vm666_vm6, %v776_v59, %v778_v3  ;;  %v3278_v49 = vld [vmem:[#allocation5_spill] sm:$0xff] }
 0x23a   : > { %860 = vmatprep.subr.mxu0 %v808_v23  ;;  %1790 = vrot.lane.b32.xlu1 %v3277_v19, %s1987_s20 }
 0x23b   : > { %v744_v62 = vpop.permute.xlu0 %743  ;;  %861 = vmatpush1.msra.mxu0 %v807_v13  ;;  %1919 = vmatprep.subr.mxu1 %v3255_v51  ;;  %v798_v13 = vsel %vm666_vm6, %v750_v2, %v752_v16 }
 0x23c   : > { %v768_v20 = vpop.permute.xlu1 %767 }
 0x23d   : > { %v804_v12 = vsel %vm666_vm6, %v766_v57, %v768_v20  ;;  %v805_v15 = vsel %vm666_vm6, %v768_v20, %v770_v8 }
 0x23e   : > { %862 = vmatprep.subr.mxu0 %v805_v15  ;;  %1794 = vrot.lane.b32.xlu1 %v3278_v49, %s1987_s20 }
 0x23f   : > { %v742_v31 = vpop.permute.xlu0 %741  ;;  %863 = vmatpush1.msra.mxu0 %v804_v12 }
 0x240   : > { %v760_v3 = vpop.permute.xlu1 %759  ;;  %v795_v19 = vsel %vm666_vm6, %v742_v31, %v744_v62 }
 0x241   : > { %v801_v4 = vsel %vm666_vm6, %v758_v52, %v760_v3  ;;  %v802_v47 = vsel %vm666_vm6, %v760_v3, %v762_v17 }
 0x242   : > { %864 = vmatprep.subr.mxu0 %v802_v47 }
 0x243   : > { %v736_v10 = vpop.permute.xlu0 %735  ;;  %865 = vmatpush1.msra.mxu0 %v801_v4 }
 0x244   : > { %v754_v59 = vpop.permute.xlu1 %753 }
 0x245   : > { %v800_v57 = vsel %vm666_vm6, %v754_v59, %v2899_v1  ;;  %v799_v8 = vsel %vm666_vm6, %v752_v16, %v754_v59  ;;  %v3280_v59 = vld [vmem:[#allocation13_spill] sm:$0xff] }
 0x246   : > { %866 = vmatprep.subr.mxu0 %v799_v8  ;;  %1920 = vmatpush3.msra.mxu1 %v800_v57 }
 0x247   : > { %v734_v60 = vpop.permute.xlu0 %733  ;;  %867 = vmatpush1.msra.mxu0 %v798_v13  ;;  %1921 = vmatprep.subr.mxu1 %v3255_v51  ;;  %v3282_v13 = vld [vmem:[#allocation15_spill] sm:$0xff] }
 0x248   : > { %v746_v52 = vpop.permute.xlu1 %745  ;;  %v792_v12 = vsel %vm666_vm6, %v734_v60, %v736_v10  ;;  %v1175_v60 = vsel %vm1172_vm8, %v3282_v13, %v2716_v38 }
 0x249   : > { %v797_v17 = vsel %vm666_vm6, %v746_v52, %v2905_v5  ;;  %v796_v23 = vsel %vm666_vm6, %v744_v62, %v746_v52  ;;  %v1173_v52 = vsel %vm1172_vm8, %v2543_v26, %v2678_v58  ;;  %v1158_v26 = vsel %vm714_vm2, %v2558_v32, %v2695_v35 }
 0x24a   : > { %868 = vmatprep.subr.mxu0 %v796_v23  ;;  %1922 = vmatpush3.msra.mxu1 %v797_v17 }
 0x24b   : > { %v728_v1 = vpop.permute.xlu0 %727  ;;  %869 = vmatpush1.msra.mxu0 %v795_v19  ;;  %1923 = vmatprep.subr.mxu1 %v3255_v51  ;;  %v1144_v19 = vsel %vm702_vm3, %v2570_v27, %v2714_v43  ;;  %v3285_v27 = vld [vmem:[#allocation19_spill] sm:$0xff] }
 0x24c   : > { %v738_v16 = vpop.permute.xlu1 %737 }
 0x24d   : > { %v794_v2 = vsel %vm666_vm6, %v738_v16, %v2909_v14  ;;  %v793_v20 = vsel %vm666_vm6, %v736_v10, %v738_v16  ;;  %v718_v14 = vld [vmem:[%s3201_s4] sm:$0xff] }
 0x24e   : > { %870 = vmatprep.subr.mxu0 %v793_v20  ;;  %1924 = vmatpush3.msra.mxu1 %v794_v2  ;;  %v3286_v16 = vld [vmem:[#allocation18_spill] sm:$0xff]  ;;  %v3287_v20 = vld [vmem:[#allocation20_spill] sm:$0xff] }
 0x24f   : > { %v726_v5 = vpop.permute.xlu0 %725  ;;  %871 = vmatpush1.msra.mxu0 %v792_v12  ;;  %1925 = vmatprep.subr.mxu1 %v3255_v51  ;;  %v1118_v2 = vsel %vm1115_vm10, %v3286_v16, %v2775_v30  ;;  %v3288_v30 = vld [vmem:[#allocation27_spill] sm:$0xff] }
 0x250   : > { %v730_v62 = vpop.permute.xlu1 %729  ;;  %v789_v31 = vsel %vm666_vm6, %v726_v5, %v728_v1 }
 0x251   : > { %v791_v15 = vsel %vm666_vm6, %v730_v62, %v2848_v44  ;;  %v790_v49 = vsel %vm666_vm6, %v728_v1, %v730_v62  ;;  %v3279_v44 = vld [vmem:[#allocation17_spill] sm:$0xff] }
 0x252   : > { %872 = vmatprep.subr.mxu0 %v790_v49  ;;  %1926 = vmatpush3.msra.mxu1 %v791_v15  ;;  %v1205_v47 = vsel %vm1202_vm5, %v3279_v44, %v2680_v61  ;;  %v1204_v10 = vsel %vm1202_vm5, %v2668_v39, %v3279_v44  ;;  %v3289_v62 = vld [vmem:[#allocation21_spill] sm:$0xff]  ;;  %v3291_v49 = vld [vmem:[#allocation22_spill] sm:$0xff] }
 0x253   : > { %v2968_v3 = vpop.permute.xlu0 %1289  ;;  %873 = vmatpush1.msra.mxu0 %v789_v31  ;;  %1927 = vmatprep.subr.mxu1 %v3255_v51  ;;  %v3290_v15 = vld [vmem:[#allocation29_spill] sm:$0xff] }
 0x254   : > { %v2971_v4 = vpop.permute.xlu1 %1291  ;;  %874 = vmatprep.subr.mxu0 %v2535_v41  ;;  %1928 = vmatpush3.msra.mxu1 %v2589_v54  ;;  %v1203_v41 = vsel %vm1202_vm5, %v3280_v59, %v2668_v39  ;;  %v1188_v39 = vsel %vm1187_vm7, %v2528_v48, %v2666_v46  ;;  %v3296_v59 = vld [vmem:[#allocation26_spill] sm:$0xff] }
 0x255   : > { %875 = vmatpush1.msra.mxu0 %v2548_v34  ;;  %1930 = vmatmul.mubr.msk.f32.vlgmr.msra.gmra.mxu1 %vm840_vm15, %v718_v14  ;;  %v3281_v34 = vld [vmem:[#allocation14_spill] sm:$0xff] }
 0x256   : > { %1430 = vmatprep.subr.mxu1 %v3255_v51  ;;  %1887 = vmatmul.mubr.msk.f32.vlgmr.msra.gmra.mxu0 %vm840_vm15, %v718_v14  ;;  %v1190_v57 = vsel %vm1187_vm7, %v3281_v34, %v2697_v40  ;;  %v1189_v8 = vsel %vm1187_vm7, %v2666_v46, %v3281_v34  ;;  %v1174_v40 = vsel %vm1172_vm8, %v2678_v58, %v3282_v13  ;;  %v3283_v46 = vld [vmem:[#allocation16_spill] sm:$0xff]  ;;  %v3293_v14 = vld [vmem:[#allocation23_spill] sm:$0xff] }
 0x257   : > { %1359 = vmatprep.subr.mxu0 %v1204_v10  ;;  %1431 = vmatpush1.msra.mxu1 %v1205_v47  ;;  %v2985_v54 = vpop.permute.xlu0 %1279  ;;  %v1160_v17 = vsel %vm714_vm2, %v3283_v46, %v2733_v50  ;;  %v1159_v23 = vsel %vm714_vm2, %v2695_v35, %v3283_v46  ;;  %v1146_v58 = vsel %vm702_vm3, %v2521_v22, %v2754_v33  ;;  %v3294_v47 = vld [vmem:[#allocation24_spill] sm:$0xff]  ;;  %v3295_v10 = vld [vmem:[#allocation25_spill] sm:$0xff] }
 0x258   : > { %1360 = vmatpush1.msra.mxu0 %v1203_v41  ;;  %1432 = vmatprep.subr.mxu1 %v3255_v51  ;;  %v2991_v61 = vpop.permute.xlu1 %1283  ;;  %v1145_v50 = vsel %vm702_vm3, %v2714_v43, %v2521_v22  ;;  %v1132_v35 = vsel %vm690_vm4, %v2530_v28, %v2779_v37  ;;  %v3284_v22 = vld [vmem:[#allocation31_spill] sm:$0xff]  ;;  %v1117_v37 = vsel %vm1115_vm10, %v2749_v42, %v3286_v16  ;;  %v3297_v34 = vld [vmem:[#allocation28_spill] sm:$0xff]  ;;  %vm1293_vm3 = vcmask 449536  }
 0x259   : > { %1361 = vmatprep.subr.mxu0 %v1189_v8  ;;  %1433 = vmatpush1.msra.mxu1 %v1190_v57  ;;  %v1131_v1 = vsel %vm690_vm4, %v3284_v22, %v2530_v28  ;;  %v1130_v43 = vsel %vm690_vm4, %v3285_v27, %v3284_v22  ;;  %v1116_v28 = vsel %vm1115_vm10, %v3287_v20, %v2749_v42  ;;  %v3292_v42 = vld [vmem:[#allocation30_spill] sm:$0xff] }
 0x25a   : > { %1362 = vmatpush1.msra.mxu0 %v1188_v39  ;;  %1434 = vmatprep.subr.mxu1 %v3255_v51 }
 0x25b   : > { %1363 = vmatprep.subr.mxu0 %v1174_v40  ;;  %1435 = vmatpush1.msra.mxu1 %v1175_v60  ;;  %v3009_v48 = vpop.permute.xlu0 %1277  ;;  %v1349_v60 = vld [vmem:[%s3203_s6 + $0x8] sm:$0xff] }
 0x25c   : > { %1364 = vmatpush1.msra.mxu0 %v1173_v52  ;;  %1436 = vmatprep.subr.mxu1 %v3255_v51  ;;  %v3015_v38 = vpop.permute.xlu1 %1275 }
 0x25d   : > { %1365 = vmatprep.subr.mxu0 %v1159_v23  ;;  %1437 = vmatpush1.msra.mxu1 %v1160_v17 }
 0x25e   : > { %1366 = vmatpush1.msra.mxu0 %v1158_v26  ;;  %1438 = vmatprep.subr.mxu1 %v3255_v51 }
 0x25f   : > { %1367 = vmatprep.subr.mxu0 %v1145_v50  ;;  %1439 = vmatpush1.msra.mxu1 %v1146_v58  ;;  %v3033_v32 = vpop.permute.xlu0 %1271 }
 0x260   : > { %1368 = vmatpush1.msra.mxu0 %v1144_v19  ;;  %1440 = vmatprep.subr.mxu1 %v3255_v51  ;;  %v3039_v33 = vpop.permute.xlu1 %1267 }
 0x261   : > { %1369 = vmatprep.subr.mxu0 %v1131_v1  ;;  %1441 = vmatpush1.msra.mxu1 %v1132_v35 }
 0x262   : > { %1370 = vmatpush1.msra.mxu0 %v1130_v43  ;;  %1442 = vmatprep.subr.mxu1 %v3255_v51 }
 0x263   : > { %1371 = vmatprep.subr.mxu0 %v1117_v37  ;;  %1443 = vmatpush1.msra.mxu1 %v1118_v2  ;;  %v3057_v12 = vpop.permute.xlu0 %1269 }
 0x264   : > { %1372 = vmatpush1.msra.mxu0 %v1116_v28  ;;  %1444 = vmatprep.subr.mxu1 %v3255_v51  ;;  %v3060_v5 = vpop.permute.xlu1 %1259  ;;  %v1348_v28 = vld [vmem:[%s3203_s6] sm:$0xff] }
 0x265   : > { %1373 = vmatprep.subr.mxu0 %v3288_v30  ;;  %1445 = vmatpush1.msra.mxu1 %v3289_v62 }
 0x266   : > { %1374 = vmatpush1.msra.mxu0 %v3290_v15  ;;  %1446 = vmatprep.subr.mxu1 %v3255_v51 }
 0x267   : > { %1375 = vmatprep.subr.mxu0 %v3291_v49  ;;  %1447 = vmatpush1.msra.mxu1 %v3292_v42  ;;  %v3068_v31 = vpop.permute.xlu0 %1263 }
 0x268   : > { %1376 = vmatpush1.msra.mxu0 %v3293_v14  ;;  %1448 = vmatprep.subr.mxu1 %v3255_v51  ;;  %v1288_v44 = vpop.permute.xlu1 %1287 }
 0x269   : > { %1377 = vmatprep.subr.mxu0 %v3294_v47  ;;  %1449 = vmatpush1.msra.mxu1 %v2742_v55  ;;  %v3298_v55 = vld [vmem:[#allocation32_spill] sm:$0xff] }
 0x26a   : > { %1378 = vmatpush1.msra.mxu0 %v3295_v10  ;;  %1450 = vmatprep.subr.mxu1 %v3255_v51 }
 0x26b   : > { %1379 = vmatprep.subr.mxu0 %v3296_v59  ;;  %1451 = vmatpush1.msra.mxu1 %v2767_v53  ;;  %v1262_v41 = vpop.permute.xlu0 %1261 }
 0x26c   : > { %1380 = vmatpush1.msra.mxu0 %v3297_v34  ;;  %1452 = vmatprep.subr.mxu1 %v3255_v51  ;;  %v1286_v57 = vpop.permute.xlu1 %1285 }
 0x26d   : > { %1381 = vmatprep.subr.mxu0 %v2814_v9  ;;  %1453 = vmatpush1.msra.mxu1 %v2824_v21  ;;  %v1319_v9 = vsel %vm1293_vm3, %v1288_v44, %v2968_v3  ;;  %v1318_v21 = vsel %vm1293_vm3, %v1286_v57, %v1288_v44  ;;  %v1609_v44 = vld [vmem:[%s3205_s8] sm:$0xff] }
 0x26e   : > { %1382 = vmatpush1.msra.mxu0 %v2834_v63  ;;  %1454 = vmatprep.subr.mxu1 %v3255_v51 }
 0x26f   : > { %1383 = vmatprep.subr.mxu0 %v3298_v55  ;;  %1455 = vmatpush1.msra.mxu1 %v2811_v56  ;;  %v1256_v8 = vpop.permute.xlu0 %1255 }
 0x270   : > { %1384 = vmatpush1.msra.mxu0 %v2784_v25  ;;  %1456 = vmatprep.subr.mxu1 %v3255_v51  ;;  %v1282_v53 = vpop.permute.xlu1 %1281 }
 0x271   : > { %1385 = vmatprep.subr.mxu0 %v2802_v29  ;;  %1457 = vmatpush1.msra.mxu1 %v2841_v11  ;;  %v1320_v29 = vsel %vm1293_vm3, %v2968_v3, %v2971_v4  ;;  %v1317_v63 = vsel %vm1293_vm3, %v1282_v53, %v2991_v61  ;;  %v1309_v61 = vsel %vm1293_vm3, %v1262_v41, %v3068_v31 }
 0x272   : > { %1386 = vmatpush1.msra.mxu0 %v2829_v6  ;;  %1458 = vmatprep.subr.mxu1 %v3255_v51 }
 0x273   : > { %1387 = vmatprep.subr.mxu0 %v2855_v0  ;;  %1459 = vmatpush1.msra.mxu1 %v2878_v45  ;;  %v1254_v56 = vpop.permute.xlu0 %1253  ;;  %v1316_v0 = vsel %vm1293_vm3, %v2985_v54, %v1282_v53 }
 0x274   : > { %1388 = vmatpush1.msra.mxu0 %v2871_v7  ;;  %1460 = vmatprep.subr.mxu1 %v3255_v51  ;;  %v1274_v25 = vpop.permute.xlu1 %1273  ;;  %v1315_v7 = vsel %vm1293_vm3, %v3009_v48, %v2985_v54  ;;  %v1306_v40 = vsel %vm1293_vm3, %v1254_v56, %v1256_v8 }
 0x275   : > { %1389 = vmatprep.subr.mxu0 %v3271_v36  ;;  %1461 = vmatpush1.msra.mxu1 %v3273_v24  ;;  %v1314_v45 = vsel %vm1293_vm3, %v1274_v25, %v3015_v38  ;;  %v1313_v36 = vsel %vm1293_vm3, %v3033_v32, %v1274_v25 }
 0x276   : > { %1390 = vmatpush1.msra.mxu0 %v3272_v18  ;;  %1476 = vmatprep.subr.mxu1 %v3255_v51  ;;  %v1312_v18 = vsel %vm1293_vm3, %v3057_v12, %v3033_v32 }
 0x277   : > { %1405 = vmatprep.subr.mxu0 %v1319_v9  ;;  %1477 = vmatpush2.msra.mxu1 %v1320_v29  ;;  %v1248_v6 = vpop.permute.xlu0 %1247 }
 0x278   : > { %1406 = vmatpush2.msra.mxu0 %v1318_v21  ;;  %1478 = vmatprep.subr.mxu1 %v3255_v51  ;;  %v1266_v11 = vpop.permute.xlu1 %1265 }
 0x279   : > { %1407 = vmatprep.subr.mxu0 %v1316_v0  ;;  %1479 = vmatpush2.msra.mxu1 %v1317_v63  ;;  %v1311_v3 = vsel %vm1293_vm3, %v1266_v11, %v3039_v33  ;;  %v1310_v54 = vsel %vm1293_vm3, %v3068_v31, %v1266_v11 }
 0x27a   : > { %1408 = vmatpush2.msra.mxu0 %v1315_v7  ;;  %1480 = vmatprep.subr.mxu1 %v3255_v51 }
 0x27b   : > { %1409 = vmatprep.subr.mxu0 %v1313_v36  ;;  %1481 = vmatpush2.msra.mxu1 %v1314_v45  ;;  %v1246_v24 = vpop.permute.xlu0 %1245 }
 0x27c   : > { %1410 = vmatpush2.msra.mxu0 %v1312_v18  ;;  %1482 = vmatprep.subr.mxu1 %v3255_v51  ;;  %v1258_v4 = vpop.permute.xlu1 %1257  ;;  %v1303_v17 = vsel %vm1293_vm3, %v1246_v24, %v1248_v6 }
 0x27d   : > { %v1308_v39 = vsel %vm1293_vm3, %v1258_v4, %v3060_v5  ;;  %1411 = vmatprep.subr.mxu0 %v1310_v54  ;;  %1483 = vmatpush2.msra.mxu1 %v1311_v3  ;;  %v1307_v13 = vsel %vm1293_vm3, %v1256_v8, %v1258_v4 }
 0x27e   : > { %1412 = vmatpush2.msra.mxu0 %v1309_v61  ;;  %1484 = vmatprep.subr.mxu1 %v3255_v51 }
 0x27f   : > { %1413 = vmatprep.subr.mxu0 %v1307_v13  ;;  %1485 = vmatpush2.msra.mxu1 %v1308_v39  ;;  %v1240_v52 = vpop.permute.xlu0 %1239 }
 0x280   : > { %1414 = vmatpush2.msra.mxu0 %v1306_v40  ;;  %v1250_v48 = vpop.permute.xlu1 %1249  ;;  %1486 = vmatprep.subr.mxu1 %v3255_v51 }
 0x281   : > { %v1304_v46 = vsel %vm1293_vm3, %v1248_v6, %v1250_v48  ;;  %1889 = vmatprep.mubr.msk.f32.mxu0 %vm840_vm15, %v1349_v60  ;;  %1890 = vmatprep.mubr.msk.f32.mxu1 %vm840_vm15, %v1349_v60 }
 0x282   : > { %1415 = vmatprep.subr.mxu0 %v1304_v46 }
 0x283   : > { %v1238_v38 = vpop.permute.xlu0 %1237  ;;  %1416 = vmatpush2.msra.mxu0 %v1303_v17 }
 0x284   : > { %v1242_v23 = vpop.permute.xlu1 %1241  ;;  %v1300_v58 = vsel %vm1293_vm3, %v1238_v38, %v1240_v52 }
 0x285   : > { %v1301_v26 = vsel %vm1293_vm3, %v1240_v52, %v1242_v23 }
 0x286   : > { %1417 = vmatprep.subr.mxu0 %v1301_v26 }
 0x287   : > { %v1232_v50 = vpop.permute.xlu0 %1231  ;;  %1418 = vmatpush2.msra.mxu0 %v1300_v58 }
 0x288   : > { %v1252_v19 = vpop.permute.xlu1 %1251 }
 0x289   : > { %v1305_v32 = vsel %vm1293_vm3, %v1250_v48, %v1252_v19 }
 0x28a   : > { %1487 = vmatpush2.msra.mxu1 %v1305_v32 }
 0x28b   : > { %v1230_v35 = vpop.permute.xlu0 %1229  ;;  %1488 = vmatprep.subr.mxu1 %v3255_v51 }
 0x28c   : > { %v1234_v33 = vpop.permute.xlu1 %1233  ;;  %v1297_v1 = vsel %vm1293_vm3, %v1230_v35, %v1232_v50 }
 0x28d   : > { %v1298_v22 = vsel %vm1293_vm3, %v1232_v50, %v1234_v33 }
 0x28e   : > { %1419 = vmatprep.subr.mxu0 %v1298_v22 }
 0x28f   : > { %v1224_v27 = vpop.permute.xlu0 %1223  ;;  %1420 = vmatpush2.msra.mxu0 %v1297_v1 }
 0x290   : > { %v1244_v43 = vpop.permute.xlu1 %1243 }
 0x291   : > { %v1302_v16 = vsel %vm1293_vm3, %v1242_v23, %v1244_v43 }
 0x292   : > { %1489 = vmatpush2.msra.mxu1 %v1302_v16 }
 0x293   : > { %v1222_v2 = vpop.permute.xlu0 %1221  ;;  %1490 = vmatprep.subr.mxu1 %v3255_v51 }
 0x294   : > { %v1226_v37 = vpop.permute.xlu1 %1225  ;;  %v1294_v12 = vsel %vm1293_vm3, %v1222_v2, %v1224_v27 }
 0x295   : > { %v1295_v20 = vsel %vm1293_vm3, %v1224_v27, %v1226_v37 }
 0x296   : > { %1421 = vmatprep.subr.mxu0 %v1295_v20 }
 0x297   : > { %v1228_v5 = vpop.permute.xlu0 %1227  ;;  %1422 = vmatpush2.msra.mxu0 %v1294_v12 }
 0x298   : > { %v1236_v30 = vpop.permute.xlu1 %1235  ;;  %1424 = vmatmul.mubr.f32.vlgmr.msra.gmra.mxu0 %v1348_v28  ;;  %v1296_v15 = vsel %vm1293_vm3, %v1226_v37, %v1228_v5 }
 0x299   : > { %v1299_v62 = vsel %vm1293_vm3, %v1234_v33, %v1236_v30  ;;  %1704 = vmatprep.mubr.f32.mxu0 %v3255_v51 }
 0x29a   : > { %1491 = vmatpush2.msra.mxu1 %v1299_v62 }
 0x29b   : > { %v1625_v49 = vpop.permute.xlu0 %1624  ;;  %1492 = vmatprep.subr.mxu1 %v3255_v51 }
 0x29c   : > { %v1623_v42 = vpop.permute.xlu1 %1622  ;;  %1493 = vmatpush2.msra.mxu1 %v1296_v15 }
 0x29d   : > { %v1629_v31 = vsel %vm666_vm6, %v1623_v42, %v1625_v49  ;;  %1495 = vmatmul.mubr.f32.vlgmr.msra.gmra.mxu1 %v1348_v28  ;;  %1932 = vmatprep.subr.mxu1 %v3255_v51 }
 0x29e   : > { %1891 = vmatprep.subr.msk.mxu0 %vm398_vm0, %v1629_v31  ;;  %1934 = vmatprep.mubr.msk.f32.mxu1 %vm1996_vm9, %v3255_v51 }
 0x29f   : > { %v1627_v14 = vpop.permute.xlu0 %1626 }
 0x2a0   : > { %v1630_v47 = vsel %vm666_vm6, %v1625_v49, %v1627_v14  ;;  %v1621_v10 = vpop.permute.xlu1 %1620 }
 0x2a1   : > { %v1628_v59 = vsel %vm666_vm6, %v1621_v10, %v1623_v42  ;;  %1933 = vmatpush3.msk.msra.mxu1 %vm398_vm0, %v1630_v47 }
 0x2a2   : > { %1935 = vmatmul.mubr.msk.f32.vlgmr.msra.gmra.mxu1 %vm388_vm1, %v1609_v44  ;;  %1892 = vmatpush1.msk.msra.mxu0 %vm398_vm0, %v1628_v59 }
 0x2a3   : > { %1893 = vmatmul.mubr.msk.f32.vlgmr.msra.gmra.mxu0 %vm388_vm1, %v1609_v44 }
 0x2ac   : > { %v1354_v41 = vpop.permute.xlu0 %1353 }
 0x2ad   : > { %v723_v51 = vpop.permute.xlu1 %722 }
 0x2b0   : > { %v1789_v34 = vpop.permute.xlu0 %1788 }
 0x2b1   : > { %v1614_v57 = vpop.permute.xlu1 %1613 }
 0x2b4   : > { %v1793_v55 = vpop.permute.xlu0 %1792 }
 0x2b5   : > { %v1791_v8 = vpop.permute.xlu1 %1790 }
 0x2b6   : > { %v1796_v53 = vsel %vm714_vm2, %v1789_v34, %v1791_v8  ;;  %v1797_v56 = vsel %vm714_vm2, %v1791_v8, %v1793_v55 }
 0x2b7   : > { %1802 = vst [vmem:[%s3177_s30] sm:$0xff] %v1796_v53  ;;  %1803 = vst [vmem:[%s3177_s30 + $0x8] sm:$0xff] %v1797_v56 }
 0x2b9   : > { %v1795_v25 = vpop.permute.xlu1 %1794 }
 0x2ba   : > { %v1798_v29 = vsel %vm714_vm2, %v1793_v55, %v1795_v25 }
 0x2bb   : > { %1804 = vst [vmem:[%s3177_s30 + $0x10] sm:$0xff] %v1798_v29 }
 0x315   : > { %v981_v9 = vpop.f32.mrf.mxu1 }
 0x316   : > { %v982_v21 = vadd.f32 %v981_v9, %v723_v51  ;;  %v910_v6 = vpop.f32.mrf.mxu0 }
 0x317   : > { %v911_v63 = vadd.f32 %v910_v6, %v723_v51  ;;  %v1931_v11 = vpop.f32.mrf.mxu1 }
 0x318   : > { %v987_v0 = vmax.f32 %v982_v21, 0.0  ;;  %v912_v7 = vpop.f32.mrf.mxu0 }
 0x319   : > { %v985_v45 = vmax.f32 %v911_v63, 0.0  ;;  %v913_v36 = vadd.f32 %v912_v7, %v723_v51 }
 0x31a   : > { %1807 = vst [vmem:[%s3177_s30 + $0x28] sm:$0xff] %v987_v0 }
 0x31b   : > { %1805 = vst [vmem:[%s3177_s30 + $0x18] sm:$0xff] %v985_v45  ;;  %v986_v18 = vmax.f32 %v913_v36, 0.0 }
 0x31d   : > { %1806 = vst [vmem:[%s3177_s30 + $0x20] sm:$0xff] %v986_v18 }
 0x358   : > { %v1425_v24 = vpop.f32.mrf.mxu0 }
 0x359   : > { %v1426_v3 = vadd.f32 %v1425_v24, %v1354_v41 }
 0x35a   : > { %v1427_v4 = vpop.f32.mrf.mxu0 }
 0x35b   : > { %v1500_v54 = vmax.f32 %v1426_v3, 0.0  ;;  %v1428_v61 = vadd.f32 %v1427_v4, %v1354_v41 }
 0x35d   : > { %1808 = vst [vmem:[%s3177_s30 + $0x30] sm:$0xff] %v1500_v54  ;;  %v1501_v39 = vmax.f32 %v1428_v61, 0.0  ;;  %v1496_v13 = vpop.f32.mrf.mxu1 }
 0x35e   : > { %v1497_v60 = vadd.f32 %v1496_v13, %v1354_v41 }
 0x35f   : > { %1809 = vst [vmem:[%s3177_s30 + $0x38] sm:$0xff] %v1501_v39  ;;  %v1498_v40 = vpop.f32.mrf.mxu1 }
 0x360   : > { %v1502_v52 = vmax.f32 %v1497_v60, 0.0 }
 0x362   : > { %1810 = vst [vmem:[%s3177_s30 + $0x40] sm:$0xff] %v1502_v52  ;;  %v1777_v48 = vpop.f32.mrf.mxu1 }
 0x363   : > { %v1778_v46 = vadd.f32 %v1777_v48, %v1614_v57  ;;  %v1706_v17 = vpop.f32.mrf.mxu0 }
 0x364   : > { %v1707_v38 = vadd.f32 %v1706_v17, %v1614_v57  ;;  %v1936_v23 = vpop.f32.mrf.mxu1 }
 0x365   : > { %v1783_v26 = vmax.f32 %v1778_v46, 0.0  ;;  %v1708_v58 = vpop.f32.mrf.mxu0 }
 0x366   : > { %v1781_v50 = vmax.f32 %v1707_v38, 0.0  ;;  %v1709_v19 = vadd.f32 %v1708_v58, %v1614_v57 }
 0x367   : > { %1813 = vst [vmem:[%s3177_s30 + $0x58] sm:$0xff] %v1783_v26 }
 0x368   : > { %1811 = vst [vmem:[%s3177_s30 + $0x48] sm:$0xff] %v1781_v50  ;;  %v1782_v32 = vmax.f32 %v1709_v19, 0.0 }
 0x36a   : > { %1812 = vst [vmem:[%s3177_s30 + $0x50] sm:$0xff] %v1782_v32 }
 0x36b PF: > { %s20_s13 = sadd.s32 1, %s1976_s13  }
 0x36c   : > { %p17_p4 = scmp.ge.s32.totalorder %s20_s13, 4  }
 0x36e   :  { %19 = sbr.rel (!%p17_p4) target bundleno = 1 (0x1), region = 90 }

</bundles_post_ra>
